<compile_context>
chip_gen: v7x
topology: tpu7x:2x2x1
jax: 0.10.0
libtpu: 0.0.40
codegen_flags: <defaults>
</compile_context>

<pallas_src>
import jax
import jax.numpy as jnp
from jax.experimental import pallas as pl
from jax.experimental.pallas import tpu as pltpu


def dwconv_kernel(x_ref, w_ref, b_ref, o_ref, xpad_ref):
    # x_ref   : (1, H, W, TC)   input tile (one batch, one channel tile), unpadded
    # w_ref   : (3, 3, TC)      depthwise filters for this channel tile
    # b_ref   : (1, TC)         bias for this channel tile
    # o_ref   : (1, H, W, TC)   output tile
    # xpad_ref: (H+2, W+2, TC)  VMEM scratch holding the zero-haloed input
    H = o_ref.shape[1]
    W = o_ref.shape[2]
    TC = o_ref.shape[3]

    # ---- Build the zero halo in VMEM (border-only writes, re-done every step so the
    # ---- kernel stays correct when the "parallel" grid is sharded across TensorCores).
    xpad_ref[pl.ds(0, 1), :, :] = jnp.zeros((1, W + 2, TC), dtype=xpad_ref.dtype)
    xpad_ref[pl.ds(H + 1, 1), :, :] = jnp.zeros((1, W + 2, TC), dtype=xpad_ref.dtype)
    xpad_ref[:, pl.ds(0, 1), :] = jnp.zeros((H + 2, 1, TC), dtype=xpad_ref.dtype)
    xpad_ref[:, pl.ds(W + 1, 1), :] = jnp.zeros((H + 2, 1, TC), dtype=xpad_ref.dtype)
    xpad_ref[pl.ds(1, H), pl.ds(1, W), :] = x_ref[0]

    # Hoisted parameter loads (once per step, not once per tap).
    wt = w_ref[...].astype(jnp.float32)       # (3, 3, TC)
    bias = b_ref[0].astype(jnp.float32)       # (TC,)

    # ---- Stage 1: reduce over dy (row offset). Leading-dim slices of the scratch are
    # ---- layout-aligned (no sublane shuffles). Each v[dx] spans the full padded width.
    rows = [xpad_ref[pl.ds(dy, H), :, :].astype(jnp.float32) for dy in range(3)]  # (H, W+2, TC)
    v = []
    for dx in range(3):
        a = rows[0] * wt[0, dx, :]
        a = a + rows[1] * wt[1, dx, :]
        a = a + rows[2] * wt[2, dx, :]
        v.append(a)

    # ---- Stage 2: combine the three column taps. Only the dx=1 / dx=2 slices are
    # ---- sublane-misaligned (2 shifted reads instead of 6 in the naive 9-tap loop).
    out = bias + v[0][:, 0:W, :]
    out = out + v[1][:, 1:W + 1, :]
    out = out + v[2][:, 2:W + 2, :]

    o_ref[0] = out.astype(o_ref.dtype)


def _pick_channel_tile(C, H, W, itemsize, budget_bytes=20 * 1024 * 1024):
    """Largest lane-dense (multiple of 128) divisor of C whose per-step VMEM footprint
    (2x double-buffered input + 2x output + haloed scratch) fits the budget."""
    if C % 128 != 0:
        return C  # single lane-padded tile (compiler masks the ragged lanes)
    tc = 128
    while (tc * 2 <= C) and (C % (tc * 2) == 0):
        cand = tc * 2
        need = (4 * H * W * cand + (H + 2) * (W + 2) * cand) * itemsize
        if need > budget_bytes:
            break
        tc = cand
    # TODO(synk): for very large H*W where even TC=128 exceeds VMEM, add row tiling of
    # the spatial plane (requires a row-halo exchange between grid steps).
    return tc


def dwconv_adaptor(x, H, W, weight, bias):
    """x: (B, N, C) with N == H*W; weight: (C, 1, 3, 3) (PyTorch layout); bias: (C,).

    Returns (B, N, C), matching DWConv_Adaptor.forward(x, H, W).
    """
    B, N, C = x.shape
    assert N == H * W

    # (B, N, C) -> NHWC; element-for-element identical to x.transpose(1, 2).view(B, C, H, W).
    x_nhwc = x.reshape(B, H, W, C)
    w = jnp.transpose(weight[:, 0], (1, 2, 0))   # (3, 3, C) per-channel filters
    b2 = bias.reshape(1, C)

    TC = _pick_channel_tile(C, H, W, x.dtype.itemsize)
    n_c = C // TC

    out = pl.pallas_call(
        dwconv_kernel,
        out_shape=jax.ShapeDtypeStruct((B, H, W, C), x.dtype),
        grid_spec=pltpu.PrefetchScalarGridSpec(
            num_scalar_prefetch=0,
            grid=(B, n_c),
            in_specs=[
                pl.BlockSpec((1, H, W, TC), lambda b, c: (b, 0, 0, c)),
                pl.BlockSpec((3, 3, TC), lambda b, c: (0, 0, c)),
                pl.BlockSpec((1, TC), lambda b, c: (0, c)),
            ],
            out_specs=pl.BlockSpec((1, H, W, TC), lambda b, c: (b, 0, 0, c)),
            scratch_shapes=[pltpu.VMEM((H + 2, W + 2, TC), x.dtype)],
        ),
        compiler_params=pltpu.CompilerParams(
            dimension_semantics=("parallel", "parallel"),
            vmem_limit_bytes=32 * 1024 * 1024,
        ),
    )(x_nhwc, w, b2)

    # NHWC -> (B, N, C), matching x.flatten(2).transpose(1, 2) in PyTorch.
    return out.reshape(B, N, C)


def dwconv_reference(x, H, W, weight, bias):
    """Pure-jnp elementwise reference (exact f32, no MXU conv, no precision ambiguity)."""
    B, N, C = x.shape
    xp = jnp.pad(x.reshape(B, H, W, C).astype(jnp.float32),
                 ((0, 0), (1, 1), (1, 1), (0, 0)))
    w = jnp.transpose(weight[:, 0], (1, 2, 0)).astype(jnp.float32)   # (3, 3, C)
    out = jnp.broadcast_to(bias.astype(jnp.float32), (B, H, W, C))
    for dy in range(3):
        for dx in range(3):
            out = out + xp[:, dy:dy + H, dx:dx + W, :] * w[dy, dx, :]
    return out.reshape(B, N, C).astype(x.dtype)


if __name__ == "__main__":
    key = jax.random.PRNGKey(0)

    # Case 1: small C (single channel tile) — reduced-dim stand-in for dim=768.
    # Case 2: C multiple of 128 with a single big lane-dense tile (TC=256).
    # Case 3: C multiple of 128 that forces multi-tile channel grid (TC=128, 3 tiles).
    for (B, H, W, C) in [(2, 16, 16, 64), (1, 8, 8, 256), (1, 8, 8, 384)]:
        N = H * W
        k1, k2, k3, key = jax.random.split(key, 4)
        x = jax.random.normal(k1, (B, N, C), dtype=jnp.float32)
        # nn.Conv2d(dim, dim, 3, 1, 1, groups=dim, bias=True) parameters
        weight = 0.1 * jax.random.normal(k2, (C, 1, 3, 3), dtype=jnp.float32)
        bias = 0.1 * jax.random.normal(k3, (C,), dtype=jnp.float32)

        out = dwconv_adaptor(x, H, W, weight, bias)
        out = jax.block_until_ready(out)

        ref = dwconv_reference(x, H, W, weight, bias)
        assert out.shape == (B, N, C)
        assert jnp.allclose(out, ref, atol=1e-4, rtol=1e-4), \
            f"mismatch vs reference for B={B} H={H} W={W} C={C}"

    print("KERNEL_OK")
</pallas_src>

<mosaic_0001>
module attributes {stable_mosaic.version = 11 : i64} {
  func.func @dwconv_kernel(%arg0: i32, %arg1: i32, %arg2: memref<1x16x16x64xf32, #tpu.memory_space<vmem>>, %arg3: memref<3x3x64xf32, #tpu.memory_space<vmem>>, %arg4: memref<1x64xf32, #tpu.memory_space<vmem>>, %arg5: memref<1x16x16x64xf32, #tpu.memory_space<vmem>>, %arg6: memref<18x18x64xf32, #tpu.memory_space<vmem>>) attributes {dimension_semantics = [#tpu.dimension_semantics<parallel>, #tpu.dimension_semantics<parallel>], iteration_bounds = array<i64: 2, 1>, scalar_prefetch = 0 : i64, scratch_operands = 1 : i64, tpu.core_type = #tpu.core_type<tc>, window_params = [{transform_indices = @transform_0, window_bounds = array<i64: 1, 16, 16, 64>}, {transform_indices = @transform_1, window_bounds = array<i64: 3, 3, 64>}, {transform_indices = @transform_2, window_bounds = array<i64: 1, 64>}, {transform_indices = @transform_3, window_bounds = array<i64: 1, 16, 16, 64>}]} {
    %cst = arith.constant 0.000000e+00 : f32
    %0 = vector.broadcast %cst : f32 to vector<1x18x64xf32>
    %c0 = arith.constant 0 : index
    %c0_0 = arith.constant 0 : index
    %c0_1 = arith.constant 0 : index
    %1 = vector.load %arg6[%c0, %c0_0, %c0_1] : memref<18x18x64xf32, #tpu.memory_space<vmem>>, vector<1x18x64xf32>
    tpu.vector_store %arg6[%c0, %c0_0, %c0_1], %0 {strides = array<i32>} : memref<18x18x64xf32, #tpu.memory_space<vmem>>, vector<1x18x64xf32>,
    %cst_2 = arith.constant 0.000000e+00 : f32
    %2 = vector.broadcast %cst_2 : f32 to vector<1x18x64xf32>
    %c17 = arith.constant 17 : index
    %c0_3 = arith.constant 0 : index
    %c0_4 = arith.constant 0 : index
    %3 = vector.load %arg6[%c17, %c0_3, %c0_4] : memref<18x18x64xf32, #tpu.memory_space<vmem>>, vector<1x18x64xf32>
    tpu.vector_store %arg6[%c17, %c0_3, %c0_4], %2 {strides = array<i32>} : memref<18x18x64xf32, #tpu.memory_space<vmem>>, vector<1x18x64xf32>,
    %cst_5 = arith.constant 0.000000e+00 : f32
    %4 = vector.broadcast %cst_5 : f32 to vector<18x1x64xf32>
    %c0_6 = arith.constant 0 : index
    %c0_7 = arith.constant 0 : index
    %c0_8 = arith.constant 0 : index
    %5 = vector.load %arg6[%c0_6, %c0_7, %c0_8] : memref<18x18x64xf32, #tpu.memory_space<vmem>>, vector<18x1x64xf32>
    tpu.vector_store %arg6[%c0_6, %c0_7, %c0_8], %4 {strides = array<i32>} : memref<18x18x64xf32, #tpu.memory_space<vmem>>, vector<18x1x64xf32>,
    %cst_9 = arith.constant 0.000000e+00 : f32
    %6 = vector.broadcast %cst_9 : f32 to vector<18x1x64xf32>
    %c0_10 = arith.constant 0 : index
    %c17_11 = arith.constant 17 : index
    %c0_12 = arith.constant 0 : index
    %7 = vector.load %arg6[%c0_10, %c17_11, %c0_12] : memref<18x18x64xf32, #tpu.memory_space<vmem>>, vector<18x1x64xf32>
    tpu.vector_store %arg6[%c0_10, %c17_11, %c0_12], %6 {strides = array<i32>} : memref<18x18x64xf32, #tpu.memory_space<vmem>>, vector<18x1x64xf32>,
    %c0_13 = arith.constant 0 : index
    %c0_14 = arith.constant 0 : index
    %c0_15 = arith.constant 0 : index
    %c0_16 = arith.constant 0 : index
    %8 = vector.load %arg2[%c0_13, %c0_14, %c0_15, %c0_16] : memref<1x16x16x64xf32, #tpu.memory_space<vmem>>, vector<1x16x16x64xf32>
    %9 = vector.shape_cast %8 : vector<1x16x16x64xf32> to vector<16x16x64xf32>
    %c1 = arith.constant 1 : index
    %c1_17 = arith.constant 1 : index
    %c0_18 = arith.constant 0 : index
    %10 = vector.load %arg6[%c1, %c1_17, %c0_18] : memref<18x18x64xf32, #tpu.memory_space<vmem>>, vector<16x16x64xf32>
    tpu.vector_store %arg6[%c1, %c1_17, %c0_18], %9 {strides = array<i32>} : memref<18x18x64xf32, #tpu.memory_space<vmem>>, vector<16x16x64xf32>,
    %c0_19 = arith.constant 0 : index
    %c0_20 = arith.constant 0 : index
    %c0_21 = arith.constant 0 : index
    %11 = vector.load %arg3[%c0_19, %c0_20, %c0_21] : memref<3x3x64xf32, #tpu.memory_space<vmem>>, vector<3x3x64xf32>
    %c0_22 = arith.constant 0 : index
    %c0_23 = arith.constant 0 : index
    %12 = vector.load %arg4[%c0_22, %c0_23] : memref<1x64xf32, #tpu.memory_space<vmem>>, vector<1x64xf32>
    %13 = vector.shape_cast %12 : vector<1x64xf32> to vector<64xf32>
    %c0_24 = arith.constant 0 : index
    %c0_25 = arith.constant 0 : index
    %c0_26 = arith.constant 0 : index
    %14 = vector.load %arg6[%c0_24, %c0_25, %c0_26] : memref<18x18x64xf32, #tpu.memory_space<vmem>>, vector<16x18x64xf32>
    %c1_27 = arith.constant 1 : index
    %c0_28 = arith.constant 0 : index
    %c0_29 = arith.constant 0 : index
    %15 = vector.load %arg6[%c1_27, %c0_28, %c0_29] : memref<18x18x64xf32, #tpu.memory_space<vmem>>, vector<16x18x64xf32>
    %c2 = arith.constant 2 : index
    %c0_30 = arith.constant 0 : index
    %c0_31 = arith.constant 0 : index
    %16 = vector.load %arg6[%c2, %c0_30, %c0_31] : memref<18x18x64xf32, #tpu.memory_space<vmem>>, vector<16x18x64xf32>
    %17 = vector.extract_strided_slice %11 {offsets = [0, 0, 0], sizes = [1, 1, 64], strides = [1, 1, 1]} : vector<3x3x64xf32> to vector<1x1x64xf32>
    %18 = vector.shape_cast %17 : vector<1x1x64xf32> to vector<64xf32>
    %19 = vector.shape_cast %18 : vector<64xf32> to vector<1x1x64xf32>
    %20 = vector.broadcast %19 : vector<1x1x64xf32> to vector<16x18x64xf32>
    %21 = arith.mulf %14, %20 : vector<16x18x64xf32>
    %22 = vector.extract_strided_slice %11 {offsets = [1, 0, 0], sizes = [1, 1, 64], strides = [1, 1, 1]} : vector<3x3x64xf32> to vector<1x1x64xf32>
    %23 = vector.shape_cast %22 : vector<1x1x64xf32> to vector<64xf32>
    %24 = vector.shape_cast %23 : vector<64xf32> to vector<1x1x64xf32>
    %25 = vector.broadcast %24 : vector<1x1x64xf32> to vector<16x18x64xf32>
    %26 = arith.mulf %15, %25 : vector<16x18x64xf32>
    %27 = arith.addf %21, %26 : vector<16x18x64xf32>
    %28 = vector.extract_strided_slice %11 {offsets = [2, 0, 0], sizes = [1, 1, 64], strides = [1, 1, 1]} : vector<3x3x64xf32> to vector<1x1x64xf32>
    %29 = vector.shape_cast %28 : vector<1x1x64xf32> to vector<64xf32>
    %30 = vector.shape_cast %29 : vector<64xf32> to vector<1x1x64xf32>
    %31 = vector.broadcast %30 : vector<1x1x64xf32> to vector<16x18x64xf32>
    %32 = arith.mulf %16, %31 : vector<16x18x64xf32>
    %33 = arith.addf %27, %32 : vector<16x18x64xf32>
    %34 = vector.extract_strided_slice %11 {offsets = [0, 1, 0], sizes = [1, 1, 64], strides = [1, 1, 1]} : vector<3x3x64xf32> to vector<1x1x64xf32>
    %35 = vector.shape_cast %34 : vector<1x1x64xf32> to vector<64xf32>
    %36 = vector.shape_cast %35 : vector<64xf32> to vector<1x1x64xf32>
    %37 = vector.broadcast %36 : vector<1x1x64xf32> to vector<16x18x64xf32>
    %38 = arith.mulf %14, %37 : vector<16x18x64xf32>
    %39 = vector.extract_strided_slice %11 {offsets = [1, 1, 0], sizes = [1, 1, 64], strides = [1, 1, 1]} : vector<3x3x64xf32> to vector<1x1x64xf32>
    %40 = vector.shape_cast %39 : vector<1x1x64xf32> to vector<64xf32>
    %41 = vector.shape_cast %40 : vector<64xf32> to vector<1x1x64xf32>
    %42 = vector.broadcast %41 : vector<1x1x64xf32> to vector<16x18x64xf32>
    %43 = arith.mulf %15, %42 : vector<16x18x64xf32>
    %44 = arith.addf %38, %43 : vector<16x18x64xf32>
    %45 = vector.extract_strided_slice %11 {offsets = [2, 1, 0], sizes = [1, 1, 64], strides = [1, 1, 1]} : vector<3x3x64xf32> to vector<1x1x64xf32>
    %46 = vector.shape_cast %45 : vector<1x1x64xf32> to vector<64xf32>
    %47 = vector.shape_cast %46 : vector<64xf32> to vector<1x1x64xf32>
    %48 = vector.broadcast %47 : vector<1x1x64xf32> to vector<16x18x64xf32>
    %49 = arith.mulf %16, %48 : vector<16x18x64xf32>
    %50 = arith.addf %44, %49 : vector<16x18x64xf32>
    %51 = vector.extract_strided_slice %11 {offsets = [0, 2, 0], sizes = [1, 1, 64], strides = [1, 1, 1]} : vector<3x3x64xf32> to vector<1x1x64xf32>
    %52 = vector.shape_cast %51 : vector<1x1x64xf32> to vector<64xf32>
    %53 = vector.shape_cast %52 : vector<64xf32> to vector<1x1x64xf32>
    %54 = vector.broadcast %53 : vector<1x1x64xf32> to vector<16x18x64xf32>
    %55 = arith.mulf %14, %54 : vector<16x18x64xf32>
    %56 = vector.extract_strided_slice %11 {offsets = [1, 2, 0], sizes = [1, 1, 64], strides = [1, 1, 1]} : vector<3x3x64xf32> to vector<1x1x64xf32>
    %57 = vector.shape_cast %56 : vector<1x1x64xf32> to vector<64xf32>
    %58 = vector.shape_cast %57 : vector<64xf32> to vector<1x1x64xf32>
    %59 = vector.broadcast %58 : vector<1x1x64xf32> to vector<16x18x64xf32>
    %60 = arith.mulf %15, %59 : vector<16x18x64xf32>
    %61 = arith.addf %55, %60 : vector<16x18x64xf32>
    %62 = vector.extract_strided_slice %11 {offsets = [2, 2, 0], sizes = [1, 1, 64], strides = [1, 1, 1]} : vector<3x3x64xf32> to vector<1x1x64xf32>
    %63 = vector.shape_cast %62 : vector<1x1x64xf32> to vector<64xf32>
    %64 = vector.shape_cast %63 : vector<64xf32> to vector<1x1x64xf32>
    %65 = vector.broadcast %64 : vector<1x1x64xf32> to vector<16x18x64xf32>
    %66 = arith.mulf %16, %65 : vector<16x18x64xf32>
    %67 = arith.addf %61, %66 : vector<16x18x64xf32>
    %68 = vector.extract_strided_slice %33 {offsets = [0, 0, 0], sizes = [16, 16, 64], strides = [1, 1, 1]} : vector<16x18x64xf32> to vector<16x16x64xf32>
    %69 = vector.shape_cast %13 : vector<64xf32> to vector<1x1x64xf32>
    %70 = vector.broadcast %69 : vector<1x1x64xf32> to vector<16x16x64xf32>
    %71 = arith.addf %70, %68 : vector<16x16x64xf32>
    %72 = vector.extract_strided_slice %50 {offsets = [0, 1, 0], sizes = [16, 16, 64], strides = [1, 1, 1]} : vector<16x18x64xf32> to vector<16x16x64xf32>
    %73 = arith.addf %71, %72 : vector<16x16x64xf32>
    %74 = vector.extract_strided_slice %67 {offsets = [0, 2, 0], sizes = [16, 16, 64], strides = [1, 1, 1]} : vector<16x18x64xf32> to vector<16x16x64xf32>
    %75 = arith.addf %73, %74 : vector<16x16x64xf32>
    %c0_32 = arith.constant 0 : index
    %c0_33 = arith.constant 0 : index
    %c0_34 = arith.constant 0 : index
    %c0_35 = arith.constant 0 : index
    %76 = vector.load %arg5[%c0_32, %c0_33, %c0_34, %c0_35] : memref<1x16x16x64xf32, #tpu.memory_space<vmem>>, vector<1x16x16x64xf32>
    %77 = vector.shape_cast %76 : vector<1x16x16x64xf32> to vector<16x16x64xf32>
    %78 = vector.shape_cast %75 : vector<16x16x64xf32> to vector<1x16x16x64xf32>
    tpu.vector_store %arg5[%c0_32, %c0_33, %c0_34, %c0_35], %78 {strides = array<i32>} : memref<1x16x16x64xf32, #tpu.memory_space<vmem>>, vector<1x16x16x64xf32>,
    return
  }
  func.func @transform_0(%arg0: i32, %arg1: i32) -> (i32, i32, i32, i32) {
    %c0_i32 = arith.constant 0 : i32
    %c0_i32_0 = arith.constant 0 : i32
    %c0_i32_1 = arith.constant 0 : i32
    return %arg0, %c0_i32, %c0_i32_0, %arg1 : i32, i32, i32, i32
  }
  func.func @transform_1(%arg0: i32, %arg1: i32) -> (i32, i32, i32) {
    %c0_i32 = arith.constant 0 : i32
    %c0_i32_0 = arith.constant 0 : i32
    %c0_i32_1 = arith.constant 0 : i32
    return %c0_i32, %c0_i32_0, %arg1 : i32, i32, i32
  }
  func.func @transform_2(%arg0: i32, %arg1: i32) -> (i32, i32) {
    %c0_i32 = arith.constant 0 : i32
    %c0_i32_0 = arith.constant 0 : i32
    return %c0_i32, %arg1 : i32, i32
  }
  func.func @transform_3(%arg0: i32, %arg1: i32) -> (i32, i32, i32, i32) {
    %c0_i32 = arith.constant 0 : i32
    %c0_i32_0 = arith.constant 0 : i32
    %c0_i32_1 = arith.constant 0 : i32
    return %arg0, %c0_i32, %c0_i32_0, %arg1 : i32, i32, i32, i32
  }
}

</mosaic_0001>

<bundles_post_ra>
// kernel: tpu_custom_call.1
= control target key start
LH: loop header
LB: loop body
LE: loop exit
PB: predicated region body
PF: predicated region fallthrough
CT: control target
= control target key end

     0   :  { %8 = vsyncpa [#allocation4], 0  ;;  %s3280_s0 = inlined_call_operand.hbm [shape: f32[2,16,16,64], index: 0, kind: input, shape index: {}]   ;;  %s3281_s1 = inlined_call_operand.hbm [shape: f32[3,3,64], index: 1, kind: input, shape index: {}]   ;;  %s3282_s2 = inlined_call_operand.vmem [shape: f32[1,64], index: 2, kind: input, shape index: {}]   ;;  %s3283_s3 = inlined_call_operand.hbm [shape: f32[2,16,16,64], index: 3, kind: output, shape index: {}]  }
   0x1   :  { %10 = vsyncpa [#allocation4 + $0x1], 0 }
   0x2   :  { %11 = vsyncpa [#allocation7], 0 }
   0x3   :  { %12 = vsyncpa [#allocation5], 0 }
   0x4   :  { %14 = vsyncpa [#allocation5 + $0x1], 0  ;;  %s2036_s12 = smov 0   ;;  %s2038_s13 = smov 0  }
   0x5   :  { %s2040_s14 = smov 0   ;;  %s2042_s15 = smov 0  }
   0x6   :  { %s2044_s16 = smov 0   ;;  %s2046_s17 = smov 0  }
   0x7 LB: > { %s1758_s18 = sadd.s32 4294967295, %s2004_s17   ;;  %s1759_s19 = sadd.s32 4294967294, %s2004_s17   ;;  %s2004_s17 = sphi %s2046_s17, %s20_s17   ;;  %s2000_s16 = sphi %s2044_s16, %s3307_s16   ;;  %s1996_s15 = sphi %s2042_s15, %s3306_s15   ;;  %s1992_s14 = sphi %s2040_s14, %s3305_s14   ;;  %s1988_s13 = sphi %s2038_s13, %s3304_s13   ;;  %s1984_s12 = sphi %s2036_s12, %s3303_s12  }
   0x8   : > { %p54_p0 = scmp.ne.s32.totalorder %s1988_s13, %s1984_s12  ;;  %p2070_p1 = scmp.eq.s32.totalorder %s1758_s18, 0 }
   0x9   : > { %p2074_p2 = scmp.eq.s32.totalorder %s1758_s18, 1  ;;  %p138_p3 = scmp.eq.s32.totalorder %s1759_s19, 1 }
   0xa   : > { %s3288_s20 = scalar_select %p2070_p1, 1, 0 }
   0xb   : > { %s3289_s21 = scalar_select %p2074_p2, 1, 0 }
   0xc   : > { %p2080_p4 = por %p2070_p1, %p54_p0  ;;  %p1760_p5 = scmp.ge.s32.totalorder %s2004_s17, 1 }
   0xd   : > { %p2085_p6 = por %p138_p3, %p54_p0  ;;  %p145_p7 = scmp.lt.s32.totalorder %s2004_s17, 3 }
   0xe   : > { %s3290_s22 = scalar_select %p2080_p4, 1, 0 }
   0xf   : > { %s3291_s23 = scalar_select %p2085_p6, 1, 0 }
  0x10   : > { %p2090_p8 = pnand %p1760_p5, %p145_p7  ;;  %s2006_s25 = smov [#allocation6]  }
  0x11   : > { %s159_s26 = sshll.u32 %s2006_s25, 4  ;;  %s32_s28 = sadd.s32 1, %s2000_s16  ;;  %s160_s26 = int_to_ptr.vmem [resolvable:$true] %s159_s26 }
  0x12   : > { %s3292_s24 = scalar_select %p2090_p8, 1, 0 }
  0x13   : > { %p1787_p9 = pneg %p2090_p8  ;;  %s1860_s4 = scalar_lea.hbm %s3281_s1, 192 }
  0x14   : > { %p1861_p12 = scmp.ne.s32.totalorder %s3281_s1, %s1860_s4  ;;  %p1867_p5 = scmp.lt.u32.totalorder %s1860_s4, %s3281_s1 }
  0x15   : > { %p2099_p11 = pnand %p1787_p9, %p2070_p1 }
  0x17   : > { %p1862_p13 = pneg %p2099_p11 }
  0x19   : > { %p1863_p0 = pnand %p1862_p13, %p1861_p12 }
  0x1b   : > { %p1864_p3 = pneg %p1863_p0 }
  0x1d   : > { %p1869_p7 = pnand %p1867_p5, %p1864_p3 }
  0x1f   : > { %1872 = shalt.err (!%p1869_p7)
}
  0x20   : > { %s1873_s9 = scalar_lea.vmem %s160_s26, 192  ;;  %p1881_p1 = scmp.lt.s32.totalorder %s160_s26, %s160_s26 }
  0x21   : > { %p1874_p9 = scmp.ne.s32.totalorder %s160_s26, %s1873_s9  ;;  %p1882_p4 = scmp.lt.s32.totalorder %s1873_s9, %s1873_s9 }
  0x23   : > { %p1876_p10 = pnand %p1874_p9, %p1862_p13  ;;  %p1883_p8 = por %p1882_p4, %p1881_p1 }
  0x25   : > { %p1877_p6 = pneg %p1876_p10 }
  0x27   : > { %p1884_p2 = pnand %p1883_p8, %p1877_p6 }
  0x29   : > { %1887 = shalt.err (!%p1884_p2)
}
  0x2a   : > { %s2007_s10 = smov 64   ;;  %s2008_s11 = smov 4  }
  0x2b   : > { %1790 = dma.hbm_to_vmem [thread:$0]  (!%p2099_p11), %s3281_s1, 192, %s160_s26, [#allocation7], %s2007_s10, %s2007_s10, %s2008_s11  }
  0x2c   : > { %p34_p1 = scmp.ge.s32.totalorder %s32_s28, 2  ;;  %s41_s25 = sadd.s32 1, %s1992_s14 }
  0x2d   : > { %p48_p2 = scmp.ne.s32.totalorder %s1992_s14, %s1988_s13  ;;  %p49_p4 = scmp.eq.s32.totalorder %s2004_s17, 0 }
  0x2e   : > { %s3309_s28 = smov (%p34_p1, %s32_s28), 0  ;;  %p3295_p8 = scmp.ne.s32.totalorder %s3289_s21, 0 }
  0x2f   : > { %p2126_p6 = por %p49_p4, %p48_p2  ;;  %s36_s27 = ssub.s32 %s2000_s16, %s3309_s28 }
  0x30   : > { %p2132_p10 = por %p3295_p8, %p48_p2  ;;  %p1800_p12 = scmp.lt.s32.totalorder %s2004_s17, 2 }
  0x31   : > { %p39_p11 = scmp.eq.s32.totalorder %s36_s27, 0  ;;  %s179_s26 = sand.u32 1, %s1992_s14  }
  0x32   : > { %s1764_s4 = sshll.u32 %s179_s26, 8  ;;  %s1777_s6 = sshll.u32 %s2000_s16, 12 }
  0x33   : > { %s2141_s5 = scalar_select %p39_p11, %s1992_s14, %s41_s25  }
  0x34   : > { %s2147_s9 = scalar_lea.hbm %s3280_s0, %s1777_s6  ;;  %s183_s21 = scalar_lea.vmem [#allocation3], %s1764_s4 }
  0x35   : > { %s191_s10 = sshll.u32 %s183_s21, 4  ;;  %p2153_p13 = pnand %p1800_p12, %p2126_p6  ;;  %s2149_s10 = int_to_ptr.vmem [resolvable:$true] %s191_s10 }
  0x36   : > { %s2157_s18 = scalar_lea.sflag [#allocation4], %s179_s26  ;;  %s1888_s19 = scalar_lea.hbm %s2147_s9, 4096 }
  0x37   : > { %p1889_p0 = scmp.ne.s32.totalorder %s2147_s9, %s1888_s19  ;;  %p1890_p3 = pneg %p2153_p13 }
  0x38   : > { %s1893_s29 = scalar_lea.hbm %s3280_s0, 8192  ;;  %p1894_p9 = scmp.lt.u32.totalorder %s2147_s9, %s3280_s0 }
  0x39   : > { %p1891_p5 = pnand %p1890_p3, %p1889_p0  ;;  %p1895_p1 = scmp.lt.u32.totalorder %s1893_s29, %s1888_s19 }
  0x3a   : > { %p1897_p4 = scmp.lt.u32.totalorder %s1888_s19, %s2147_s9 }
  0x3b   : > { %p1892_p7 = pneg %p1891_p5  ;;  %p1896_p2 = por %p1895_p1, %p1894_p9 }
  0x3d   : > { %p1898_p6 = por %p1897_p4, %p1896_p2 }
  0x3f   : > { %p1899_p8 = pnand %p1898_p6, %p1892_p7 }
  0x41   : > { %1902 = shalt.err (!%p1899_p8)
}
  0x42   : > { %s1903_s26 = scalar_lea.vmem %s2149_s10, 4096  ;;  %s2009_s7 = smov [#allocation3]  }
  0x43   : > { %p1904_p12 = scmp.ne.s32.totalorder %s2149_s10, %s1903_s26  ;;  %s1908_s8 = sshll.u32 %s2009_s7, 4  ;;  %s1909_s8 = int_to_ptr.vmem [resolvable:$false] %s1908_s8 }
  0x44   : > { %s1910_s21 = scalar_lea.vmem %s1909_s8, 8192  ;;  %p1911_p5 = scmp.lt.s32.totalorder %s2149_s10, %s1909_s8 }
  0x45   : > { %p1906_p11 = pnand %p1904_p12, %p1890_p3  ;;  %p1912_p9 = scmp.lt.s32.totalorder %s1910_s21, %s1903_s26 }
  0x47   : > { %p1907_p0 = pneg %p1906_p11  ;;  %p1913_p1 = por %p1912_p9, %p1911_p5 }
  0x49   : > { %p1914_p2 = pnand %p1913_p1, %p1907_p0 }
  0x4b   : > { %1917 = shalt.err (!%p1914_p2)
}
  0x4c   : > { %s2010_s19 = smov 128   ;;  %s2011_s25 = smov 8  }
  0x4d   : > { %1794 = dma.hbm_to_vmem [thread:$0]  (!%p2153_p13), %s2147_s9, 4096, %s2149_s10, %s2157_s18, %s2010_s19, %s2010_s19, %s2011_s25  }
  0x4e   : > { %p3298_p3 = scmp.ne.s32.totalorder %s3292_s24, 0 }
  0x4f   : > { %s2188_s27 = sand.u32 (!%p3298_p3), 1, %s1988_s13   ;;  %p3299_p7 = scmp.ne.s32.totalorder (!%p3298_p3), %s3290_s22, 0 }
  0x50   : > { %203 = sbr.rel (%p3298_p3) target bundleno = 367 (0x16f), region = 32  ;;  %s1768_s29 = sshll.u32 (!%p3298_p3), %s2188_s27, 8 }
  0x51   : > { %s206_s4 = scalar_lea.sflag (!%p3298_p3), [#allocation4], %s2188_s27  ;;  %s2194_s6 = scalar_lea.vmem (!%p3298_p3), [#allocation3], %s1768_s29 }
  0x57   : > { %1971 = dma.done.wait (%p3299_p7), %s206_s4, 4096  }
  0x58   : > { %1973 = vsyncadd (%p3299_p7), %s206_s4, 4294963200  ;;  %p3300_p13 = scmp.ne.s32.totalorder %s3288_s20, 0 }
  0x5a   : > { %1975 = dma.done.wait (%p3300_p13), [#allocation7], 192  }
  0x5b   : > { %1977 = vsyncadd (%p3300_p13), [#allocation7], 4294967104  ;;  %vm242_vm0 = vcmask 523264   ;;  %vm245_vm1 = vcmask 517120   ;;  %vm251_vm2 = vcmask 516096   ;;  %v2012_v0 = vmov 0.0  }
  0x5c   : > { %243 = vst.msk [vmem:[#allocation2] sm:$0xff] %vm242_vm0, %v2012_v0  ;;  %244 = vst.msk [vmem:[#allocation2 + $0x8] sm:$0xff] %vm242_vm0, %v2012_v0  ;;  %v502_v1 = vlaneseq  ;;  %v288_v2 = vld [vmem:[%s2194_s6] sm:$0xff]  ;;  %v289_v3 = vld [vmem:[%s2194_s6 + $0x8] sm:$0xff]  ;;  %vm1264_vm3 = vcmask 1046528   ;;  %vm1457_vm4 = vcmask 1045504  }
  0x5d   : > { %248 = vst.msk [vmem:[#allocation2 + $0x198] sm:$0xff] %vm242_vm0, %v2012_v0  ;;  %249 = vst.msk [vmem:[#allocation2 + $0x1a0] sm:$0xff] %vm242_vm0, %v2012_v0  ;;  %v290_v4 = vld [vmem:[%s2194_s6 + $0x10] sm:$0xff]  ;;  %v291_v5 = vld [vmem:[%s2194_s6 + $0x18] sm:$0xff]  ;;  %s2399_s24 = scalar_lea.vmem [#allocation8], %s1768_s29  ;;  %s1778_s11 = sshll.u32 %s1996_s15, 12 }
  0x5e   : > { %246 = vst.msk [vmem:[#allocation2 + $0x10] sm:$0x3] %vm245_vm1, %v2012_v0  ;;  %250 = vst.msk [vmem:[#allocation2 + $0x1a8] sm:$0x3] %vm245_vm1, %v2012_v0  ;;  %v292_v6 = vld [vmem:[%s2194_s6 + $0x20] sm:$0xff]  ;;  %v293_v7 = vld [vmem:[%s2194_s6 + $0x28] sm:$0xff]  ;;  %s3227_s8 = scalar_lea.hbm %s3283_s3, %s1778_s11 }
  0x5f   : > { %253 = vst.msk [vmem:[#allocation2 + $0x18] sm:$0x1] %vm251_vm2, %v2012_v0  ;;  %254 = vst.msk [vmem:[#allocation2 + $0x30] sm:$0x1] %vm251_vm2, %v2012_v0  ;;  %v294_v8 = vld [vmem:[%s2194_s6 + $0x30] sm:$0xff]  ;;  %v295_v9 = vld [vmem:[%s2194_s6 + $0x38] sm:$0xff] }
  0x60   : > { %255 = vst.msk [vmem:[#allocation2 + $0x48] sm:$0x1] %vm251_vm2, %v2012_v0  ;;  %256 = vst.msk [vmem:[#allocation2 + $0x60] sm:$0x1] %vm251_vm2, %v2012_v0  ;;  %v296_v10 = vld [vmem:[%s2194_s6 + $0x40] sm:$0xff]  ;;  %v297_v11 = vld [vmem:[%s2194_s6 + $0x48] sm:$0xff] }
  0x61   : > { %257 = vst.msk [vmem:[#allocation2 + $0x78] sm:$0x1] %vm251_vm2, %v2012_v0  ;;  %258 = vst.msk [vmem:[#allocation2 + $0x90] sm:$0x1] %vm251_vm2, %v2012_v0  ;;  %v298_v12 = vld [vmem:[%s2194_s6 + $0x50] sm:$0xff]  ;;  %v299_v13 = vld [vmem:[%s2194_s6 + $0x58] sm:$0xff] }
  0x62   : > { %259 = vst.msk [vmem:[#allocation2 + $0xa8] sm:$0x1] %vm251_vm2, %v2012_v0  ;;  %260 = vst.msk [vmem:[#allocation2 + $0xc0] sm:$0x1] %vm251_vm2, %v2012_v0  ;;  %v503_v14 = vshrl.u32 %v502_v1, 7  ;;  %v300_v15 = vld [vmem:[%s2194_s6 + $0x60] sm:$0xff] }
  0x63   : > { %261 = vst.msk [vmem:[#allocation2 + $0xd8] sm:$0x1] %vm251_vm2, %v2012_v0  ;;  %262 = vst.msk [vmem:[#allocation2 + $0xf0] sm:$0x1] %vm251_vm2, %v2012_v0  ;;  %v301_v16 = vld [vmem:[%s2194_s6 + $0x68] sm:$0xff]  ;;  %v302_v17 = vld [vmem:[%s2194_s6 + $0x70] sm:$0xff] }
  0x64   : > { %263 = vst.msk [vmem:[#allocation2 + $0x108] sm:$0x1] %vm251_vm2, %v2012_v0  ;;  %264 = vst.msk [vmem:[#allocation2 + $0x120] sm:$0x1] %vm251_vm2, %v2012_v0  ;;  %v303_v18 = vld [vmem:[%s2194_s6 + $0x78] sm:$0xff]  ;;  %v304_v19 = vld [vmem:[%s2194_s6 + $0x80] sm:$0xff] }
  0x65   : > { %265 = vst.msk [vmem:[#allocation2 + $0x138] sm:$0x1] %vm251_vm2, %v2012_v0  ;;  %266 = vst.msk [vmem:[#allocation2 + $0x150] sm:$0x1] %vm251_vm2, %v2012_v0  ;;  %v305_v20 = vld [vmem:[%s2194_s6 + $0x88] sm:$0xff]  ;;  %v306_v21 = vld [vmem:[%s2194_s6 + $0x90] sm:$0xff] }
  0x66   : > { %267 = vst.msk [vmem:[#allocation2 + $0x168] sm:$0x1] %vm251_vm2, %v2012_v0  ;;  %268 = vst.msk [vmem:[#allocation2 + $0x180] sm:$0x1] %vm251_vm2, %v2012_v0  ;;  %v307_v22 = vld [vmem:[%s2194_s6 + $0x98] sm:$0xff]  ;;  %v308_v23 = vld [vmem:[%s2194_s6 + $0xa0] sm:$0xff] }
  0x67   : > { %271 = vst.msk [vmem:[#allocation2 + $0x29] sm:$0x1] %vm251_vm2, %v2012_v0  ;;  %272 = vst.msk [vmem:[#allocation2 + $0x41] sm:$0x1] %vm251_vm2, %v2012_v0  ;;  %v309_v24 = vld [vmem:[%s2194_s6 + $0xa8] sm:$0xff]  ;;  %v310_v25 = vld [vmem:[%s2194_s6 + $0xb0] sm:$0xff] }
  0x68   : > { %273 = vst.msk [vmem:[#allocation2 + $0x59] sm:$0x1] %vm251_vm2, %v2012_v0  ;;  %274 = vst.msk [vmem:[#allocation2 + $0x71] sm:$0x1] %vm251_vm2, %v2012_v0  ;;  %v311_v26 = vld [vmem:[%s2194_s6 + $0xb8] sm:$0xff]  ;;  %v504_v27 = vsub.s32 0, %v503_v14 }
  0x69   : > { %275 = vst.msk [vmem:[#allocation2 + $0x89] sm:$0x1] %vm251_vm2, %v2012_v0  ;;  %276 = vst.msk [vmem:[#allocation2 + $0xa1] sm:$0x1] %vm251_vm2, %v2012_v0  ;;  %v676_v28 = vsub.s32 1, %v503_v14  ;;  %v928_v29 = vsub.s32 2, %v503_v14 }
  0x6a   : > { %277 = vst.msk [vmem:[#allocation2 + $0xb9] sm:$0x1] %vm251_vm2, %v2012_v0  ;;  %278 = vst.msk [vmem:[#allocation2 + $0xd1] sm:$0x1] %vm251_vm2, %v2012_v0  ;;  %v312_v30 = vld [vmem:[%s2194_s6 + $0xc0] sm:$0xff]  ;;  %v313_v31 = vld [vmem:[%s2194_s6 + $0xc8] sm:$0xff] }
  0x6b   : > { %279 = vst.msk [vmem:[#allocation2 + $0xe9] sm:$0x1] %vm251_vm2, %v2012_v0  ;;  %280 = vst.msk [vmem:[#allocation2 + $0x101] sm:$0x1] %vm251_vm2, %v2012_v0  ;;  %v314_v32 = vld [vmem:[%s2194_s6 + $0xd0] sm:$0xff]  ;;  %v315_v33 = vld [vmem:[%s2194_s6 + $0xd8] sm:$0xff] }
  0x6c   : > { %281 = vst.msk [vmem:[#allocation2 + $0x119] sm:$0x1] %vm251_vm2, %v2012_v0  ;;  %282 = vst.msk [vmem:[#allocation2 + $0x131] sm:$0x1] %vm251_vm2, %v2012_v0  ;;  %v316_v34 = vld [vmem:[%s2194_s6 + $0xe0] sm:$0xff]  ;;  %v317_v35 = vld [vmem:[%s2194_s6 + $0xe8] sm:$0xff] }
  0x6d   : > { %283 = vst.msk [vmem:[#allocation2 + $0x149] sm:$0x1] %vm251_vm2, %v2012_v0  ;;  %284 = vst.msk [vmem:[#allocation2 + $0x161] sm:$0x1] %vm251_vm2, %v2012_v0  ;;  %v318_v36 = vld [vmem:[%s2194_s6 + $0xf0] sm:$0xff]  ;;  %v319_v37 = vld [vmem:[%s2194_s6 + $0xf8] sm:$0xff] }
  0x6e   : > { %285 = vst.msk [vmem:[#allocation2 + $0x179] sm:$0x1] %vm251_vm2, %v2012_v0  ;;  %286 = vst.msk [vmem:[#allocation2 + $0x191] sm:$0x1] %vm251_vm2, %v2012_v0  ;;  %v353_v38 = vld [vmem:[#allocation6] sm:$0x7] }
  0x6f   : > { %252 = vst.msk [vmem:[#allocation2] sm:$0x1] %vm251_vm2, %v2012_v0  ;;  %269 = vst.msk [vmem:[#allocation2 + $0x198] sm:$0x1] %vm251_vm2, %v2012_v0  ;;  %v354_v39 = vld [vmem:[#allocation6 + $0x4] sm:$0x7]  ;;  %v2308_v41 = vrot.slane %v353_v38, %v504_v27  ;;  %v2310_v42 = vrot.slane %v353_v38, %v676_v28  ;;  %v2312_v43 = vrot.slane %v353_v38, %v928_v29 }
  0x70   : > { %270 = vst.msk [vmem:[#allocation2 + $0x11] sm:$0x1] %vm251_vm2, %v2012_v0  ;;  %287 = vst.msk [vmem:[#allocation2 + $0x1a9] sm:$0x1] %vm251_vm2, %v2012_v0  ;;  %v355_v40 = vld [vmem:[#allocation6 + $0x8] sm:$0x7]  ;;  %v2316_v47 = vrot.slane %v354_v39, %v504_v27  ;;  %v2320_v49 = vrot.slane %v354_v39, %v676_v28  ;;  %v2347_v1 = vrot.slane %v354_v39, %v928_v29 }
  0x71   : > { %321 = vst.msk [vmem:[#allocation2 + $0x19] sm:$0xff] %vm242_vm0, %v288_v2  ;;  %322 = vst.msk [vmem:[#allocation2 + $0x21] sm:$0xff] %vm242_vm0, %v289_v3  ;;  %v358_v45 = vld [vmem:[#allocation2 + $0x8] sm:$0xff]  ;;  %v2318_v48 = vrot.slane %v355_v40, %v504_v27  ;;  %v2322_v50 = vrot.slane %v355_v40, %v676_v28  ;;  %s1649_s18 = sshll.u32 %s2399_s24, 4  ;;  %s1635_s15 = scalar_lea.sflag [#allocation5], %s2188_s27  ;;  %s3229_s18 = int_to_ptr.vmem [resolvable:$true] %s1649_s18 }
  0x72   : > { %323 = vst.msk [vmem:[#allocation2 + $0x31] sm:$0xff] %vm242_vm0, %v290_v4  ;;  %324 = vst.msk [vmem:[#allocation2 + $0x39] sm:$0xff] %vm242_vm0, %v291_v5  ;;  %v679_v56 = vmul.f32 %v2310_v42, %v358_v45  ;;  %v931_v0 = vmul.f32 %v2312_v43, %v358_v45  ;;  %v2349_v5 = vrot.slane %v355_v40, %v928_v29  ;;  %s1918_s21 = scalar_lea.vmem %s3229_s18, 4096  ;;  %s2013_s19 = smov [#allocation8]  }
  0x73   : > { %325 = vst.msk [vmem:[#allocation2 + $0x49] sm:$0xff] %vm242_vm0, %v292_v6  ;;  %326 = vst.msk [vmem:[#allocation2 + $0x51] sm:$0xff] %vm242_vm0, %v293_v7  ;;  %v2354_v6 = vld [vmem:[%s3282_s2] ss:$0 sm:$0xff]  ;;  %p1919_p4 = scmp.ne.s32.totalorder %s3229_s18, %s1918_s21  ;;  %s1922_s25 = sshll.u32 %s2013_s19, 4  ;;  %s1923_s25 = int_to_ptr.vmem [resolvable:$false] %s1922_s25 }
  0x74   : > { %327 = vst.msk [vmem:[#allocation2 + $0x61] sm:$0xff] %vm242_vm0, %v294_v8  ;;  %328 = vst.msk [vmem:[#allocation2 + $0x69] sm:$0xff] %vm242_vm0, %v295_v9  ;;  %v507_v9 = vmul.f32 %v2308_v41, %v358_v45  ;;  %s1924_s29 = scalar_lea.vmem %s1923_s25, 8192  ;;  %p1925_p12 = scmp.lt.s32.totalorder %s3229_s18, %s1923_s25 }
  0x75   : > { %329 = vst.msk [vmem:[#allocation2 + $0x79] sm:$0xff] %vm242_vm0, %v296_v10  ;;  %330 = vst.msk [vmem:[#allocation2 + $0x81] sm:$0xff] %vm242_vm0, %v297_v11  ;;  %p1920_p6 = pnand %p1919_p4, %p2132_p10  ;;  %p1926_p11 = scmp.lt.s32.totalorder %s1924_s29, %s1918_s21 }
  0x76   : > { %331 = vst.msk [vmem:[#allocation2 + $0x91] sm:$0xff] %vm242_vm0, %v298_v12  ;;  %332 = vst.msk [vmem:[#allocation2 + $0x99] sm:$0xff] %vm242_vm0, %v299_v13  ;;  %v357_v44 = vld [vmem:[#allocation2] sm:$0xff] }
  0x77   : > { %333 = vst.msk [vmem:[#allocation2 + $0xa9] sm:$0xff] %vm242_vm0, %v300_v15  ;;  %334 = vst.msk [vmem:[#allocation2 + $0xb1] sm:$0xff] %vm242_vm0, %v301_v16  ;;  %v506_v54 = vmul.f32 %v2308_v41, %v357_v44  ;;  %v678_v55 = vmul.f32 %v2310_v42, %v357_v44  ;;  %v930_v57 = vmul.f32 %v2312_v43, %v357_v44  ;;  %v359_v15 = vld [vmem:[#allocation2 + $0x10] sm:$0x3]  ;;  %p1921_p8 = pneg %p1920_p6  ;;  %p1927_p0 = por %p1926_p11, %p1925_p12 }
  0x78   : > { %335 = vst.msk [vmem:[#allocation2 + $0xc1] sm:$0xff] %vm242_vm0, %v302_v17  ;;  %336 = vst.msk [vmem:[#allocation2 + $0xc9] sm:$0xff] %vm242_vm0, %v303_v18  ;;  %v2314_v46 = vld [vmem:[#allocation2 + $0x18] sm:$0xff]  ;;  %v2324_v51 = vld [vmem:[#allocation2 + $0x20] sm:$0xff]  ;;  %v680_v28 = vmul.f32 %v2310_v42, %v359_v15 }
  0x79   : > { %337 = vst.msk [vmem:[#allocation2 + $0xd9] sm:$0xff] %vm242_vm0, %v304_v19  ;;  %338 = vst.msk [vmem:[#allocation2 + $0xe1] sm:$0xff] %vm242_vm0, %v305_v20  ;;  %v2326_v52 = vld [vmem:[#allocation2 + $0x30] sm:$0xff]  ;;  %v2328_v53 = vld [vmem:[#allocation2 + $0x38] sm:$0xff]  ;;  %v542_v58 = vmul.f32 %v2316_v47, %v2314_v46  ;;  %v730_v60 = vmul.f32 %v2320_v49, %v2314_v46  ;;  %v731_v61 = vmul.f32 %v2320_v49, %v2324_v51  ;;  %p1928_p5 = pnand %p1927_p0, %p1921_p8 }
  0x7a   : > { %339 = vst.msk [vmem:[#allocation2 + $0xf1] sm:$0xff] %vm242_vm0, %v306_v21  ;;  %340 = vst.msk [vmem:[#allocation2 + $0xf9] sm:$0xff] %vm242_vm0, %v307_v22  ;;  %v610_v59 = vmul.f32 %v2318_v48, %v2326_v52  ;;  %v830_v62 = vmul.f32 %v2322_v50, %v2326_v52  ;;  %v831_v63 = vmul.f32 %v2322_v50, %v2328_v53  ;;  %v407_v16 = vld [vmem:[#allocation2 + $0x28] sm:$0x3]  ;;  %v456_v20 = vld [vmem:[#allocation2 + $0x40] sm:$0x3] }
  0x7b   : > { %341 = vst.msk [vmem:[#allocation2 + $0x109] sm:$0xff] %vm242_vm0, %v308_v23  ;;  %342 = vst.msk [vmem:[#allocation2 + $0x111] sm:$0xff] %vm242_vm0, %v309_v24  ;;  %v574_v2 = vadd.f32 %v542_v58, %v506_v54  ;;  %v778_v3 = vadd.f32 %v730_v60, %v678_v55  ;;  %v779_v4 = vadd.f32 %v731_v61, %v679_v56  ;;  %v2383_v56 = vld [vmem:[#allocation2 + $0x50] sm:$0xff] }
  0x7c   : > { %343 = vst.msk [vmem:[#allocation2 + $0x121] sm:$0xff] %vm242_vm0, %v310_v25  ;;  %344 = vst.msk [vmem:[#allocation2 + $0x129] sm:$0xff] %vm242_vm0, %v311_v26  ;;  %v982_v7 = vmul.f32 %v2347_v1, %v2314_v46  ;;  %v983_v8 = vmul.f32 %v2347_v1, %v2324_v51  ;;  %v543_v10 = vmul.f32 %v2316_v47, %v2324_v51 }
  0x7d   : > { %345 = vst.msk [vmem:[#allocation2 + $0x139] sm:$0xff] %vm242_vm0, %v312_v30  ;;  %346 = vst.msk [vmem:[#allocation2 + $0x141] sm:$0xff] %vm242_vm0, %v313_v31  ;;  %v642_v11 = vadd.f32 %v610_v59, %v574_v2  ;;  %v878_v12 = vadd.f32 %v830_v62, %v778_v3  ;;  %v879_v13 = vadd.f32 %v831_v63, %v779_v4 }
  0x7e   : > { %347 = vst.msk [vmem:[#allocation2 + $0x151] sm:$0xff] %vm242_vm0, %v314_v32  ;;  %348 = vst.msk [vmem:[#allocation2 + $0x159] sm:$0xff] %vm242_vm0, %v315_v33  ;;  %v1082_v14 = vmul.f32 %v2349_v5, %v2326_v52  ;;  %v1030_v17 = vadd.f32 %v982_v7, %v930_v57  ;;  %v1031_v18 = vadd.f32 %v983_v8, %v931_v0 }
  0x7f   : > { %349 = vst.msk [vmem:[#allocation2 + $0x169] sm:$0xff] %vm242_vm0, %v316_v34  ;;  %350 = vst.msk [vmem:[#allocation2 + $0x171] sm:$0xff] %vm242_vm0, %v317_v35  ;;  %v1083_v19 = vmul.f32 %v2349_v5, %v2328_v53  ;;  %v575_v21 = vadd.f32 %v543_v10, %v507_v9  ;;  %v1184_v22 = vadd.f32 %v2354_v6, %v642_v11  ;;  %v1265_v23 = vrot.slane %v878_v12, 1  ;;  %v2375_v34 = vld [vmem:[#allocation2 + $0x48] sm:$0xff] }
  0x80   : > { %351 = vst.msk [vmem:[#allocation2 + $0x181] sm:$0xff] %vm242_vm0, %v318_v36  ;;  %352 = vst.msk [vmem:[#allocation2 + $0x189] sm:$0xff] %vm242_vm0, %v319_v37  ;;  %v1266_v24 = vrot.slane %v879_v13, 1  ;;  %v611_v25 = vmul.f32 %v2318_v48, %v2328_v53  ;;  %v1130_v26 = vadd.f32 %v1082_v14, %v1030_v17  ;;  %v732_v29 = vmul.f32 %v2320_v49, %v407_v16 }
  0x81   : > { %v1131_v27 = vadd.f32 %v1083_v19, %v1031_v18  ;;  %v832_v32 = vmul.f32 %v2322_v50, %v456_v20  ;;  %v932_v33 = vmul.f32 %v2312_v43, %v359_v15  ;;  %v984_v39 = vmul.f32 %v2347_v1, %v407_v16 }
  0x82   : > { %v1267_v30 = vsel %vm1264_vm3, %v1265_v23, %v1266_v24  ;;  %v643_v31 = vadd.f32 %v611_v25, %v575_v21  ;;  %v1458_v36 = vrot.slane %v1130_v26, 2  ;;  %v780_v38 = vadd.f32 %v732_v29, %v680_v28  ;;  %v362_v25 = vld [vmem:[#allocation2 + $0x28] sm:$0x3]  ;;  %v410_v26 = vld [vmem:[#allocation2 + $0x40] sm:$0x3] }
  0x83   : > { %v1377_v35 = vadd.f32 %v1267_v30, %v1184_v22  ;;  %v1459_v37 = vrot.slane %v1131_v27, 2  ;;  %v1084_v40 = vmul.f32 %v2349_v5, %v456_v20  ;;  %v508_v45 = vmul.f32 %v2308_v41, %v2314_v46 }
  0x84   : > { %v1185_v44 = vadd.f32 %v2354_v6, %v643_v31  ;;  %v880_v55 = vadd.f32 %v832_v32, %v780_v38  ;;  %v544_v57 = vmul.f32 %v2316_v47, %v2326_v52  ;;  %v612_v58 = vmul.f32 %v2318_v48, %v2375_v34  ;;  %v459_v31 = vld [vmem:[#allocation2 + $0x58] sm:$0x3] }
  0x85   : > { %v1460_v54 = vsel %vm1457_vm4, %v1458_v36, %v1459_v37  ;;  %v1032_v60 = vadd.f32 %v984_v39, %v932_v33  ;;  %v681_v61 = vmul.f32 %v2310_v42, %v2314_v46  ;;  %v682_v62 = vmul.f32 %v2310_v42, %v2324_v51 }
  0x86   : > { %v1570_v59 = vadd.f32 %v1460_v54, %v1377_v35  ;;  %v1268_v63 = vrot.slane %v880_v55, 1  ;;  %v576_v0 = vadd.f32 %v544_v57, %v508_v45  ;;  %v733_v2 = vmul.f32 %v2320_v49, %v2326_v52  ;;  %v2434_v55 = vld [vmem:[#allocation2 + $0x60] sm:$0xff] }
  0x87   : > { %v734_v3 = vmul.f32 %v2320_v49, %v2328_v53  ;;  %v1132_v4 = vadd.f32 %v1084_v40, %v1032_v60  ;;  %v833_v7 = vmul.f32 %v2322_v50, %v2375_v34  ;;  %v834_v8 = vmul.f32 %v2322_v50, %v2383_v56 }
  0x88   : > { %1602 = vst.msk [vmem:[%s2399_s24] sm:$0xff] %vm242_vm0, %v1570_v59  ;;  %v933_v9 = vmul.f32 %v2312_v43, %v2314_v46  ;;  %v1269_v10 = vsel %vm1264_vm3, %v1266_v24, %v1268_v63  ;;  %v644_v11 = vadd.f32 %v612_v58, %v576_v0  ;;  %v781_v12 = vadd.f32 %v733_v2, %v681_v61 }
  0x89   : > { %v782_v13 = vadd.f32 %v734_v3, %v682_v62  ;;  %v1378_v14 = vadd.f32 %v1269_v10, %v1185_v44  ;;  %v1461_v15 = vrot.slane %v1132_v4, 2  ;;  %v934_v16 = vmul.f32 %v2312_v43, %v2324_v51 }
  0x8a   : > { %v985_v17 = vmul.f32 %v2347_v1, %v2326_v52  ;;  %v881_v18 = vadd.f32 %v833_v7, %v781_v12  ;;  %v986_v20 = vmul.f32 %v2347_v1, %v2328_v53  ;;  %v1085_v46 = vmul.f32 %v2349_v5, %v2375_v34  ;;  %v2444_v7 = vld [vmem:[#allocation2 + $0x68] sm:$0xff] }
  0x8b   : > { %v882_v19 = vadd.f32 %v834_v8, %v782_v13  ;;  %v1462_v21 = vsel %vm1457_vm4, %v1459_v37, %v1461_v15  ;;  %v1086_v23 = vmul.f32 %v2349_v5, %v2383_v56  ;;  %v1186_v24 = vadd.f32 %v2354_v6, %v644_v11 }
  0x8c   : > { %v1033_v22 = vadd.f32 %v985_v17, %v933_v9  ;;  %v1571_v27 = vadd.f32 %v1462_v21, %v1378_v14  ;;  %v1034_v28 = vadd.f32 %v986_v20, %v934_v16  ;;  %v1270_v29 = vrot.slane %v881_v18, 1 }
  0x8d   : > { %v1271_v30 = vrot.slane %v882_v19, 1  ;;  %v509_v33 = vmul.f32 %v2308_v41, %v2324_v51  ;;  %v545_v35 = vmul.f32 %v2316_v47, %v2328_v53  ;;  %v613_v36 = vmul.f32 %v2318_v48, %v2383_v56 }
  0x8e   : > { %v1133_v32 = vadd.f32 %v1085_v46, %v1033_v22  ;;  %1603 = vst.msk [vmem:[%s2399_s24 + $0x8] sm:$0xff] %vm242_vm0, %v1571_v27  ;;  %v1134_v37 = vadd.f32 %v1086_v23, %v1034_v28  ;;  %v683_v39 = vmul.f32 %v2310_v42, %v362_v25  ;;  %v735_v40 = vmul.f32 %v2320_v49, %v410_v26 }
  0x8f   : > { %v1272_v38 = vsel %vm1264_vm3, %v1270_v29, %v1271_v30  ;;  %v577_v54 = vadd.f32 %v545_v35, %v509_v33  ;;  %v835_v51 = vmul.f32 %v2322_v50, %v459_v31  ;;  %v935_v59 = vmul.f32 %v2312_v43, %v362_v25 }
  0x90   : > { %v1379_v44 = vadd.f32 %v1272_v38, %v1186_v24  ;;  %v1463_v45 = vrot.slane %v1133_v32, 2  ;;  %v1464_v57 = vrot.slane %v1134_v37, 2  ;;  %v783_v58 = vadd.f32 %v735_v40, %v683_v39  ;;  %v413_v37 = vld [vmem:[#allocation2 + $0x58] sm:$0x3]  ;;  %v462_v38 = vld [vmem:[#allocation2 + $0x70] sm:$0x3] }
  0x91   : > { %v987_v60 = vmul.f32 %v2347_v1, %v410_v26  ;;  %v645_v61 = vadd.f32 %v613_v36, %v577_v54  ;;  %v1087_v62 = vmul.f32 %v2349_v5, %v459_v31  ;;  %v510_v63 = vmul.f32 %v2308_v41, %v2326_v52  ;;  %v365_v36 = vld [vmem:[#allocation2 + $0x40] sm:$0x3] }
  0x92   : > { %v546_v0 = vmul.f32 %v2316_v47, %v2375_v34  ;;  %v1465_v2 = vsel %vm1457_vm4, %v1463_v45, %v1464_v57  ;;  %v883_v3 = vadd.f32 %v835_v51, %v783_v58  ;;  %v614_v8 = vmul.f32 %v2318_v48, %v2434_v55 }
  0x93   : > { %v1035_v4 = vadd.f32 %v987_v60, %v935_v59  ;;  %v1572_v9 = vadd.f32 %v1465_v2, %v1379_v44  ;;  %v1187_v10 = vadd.f32 %v2354_v6, %v645_v61  ;;  %v684_v12 = vmul.f32 %v2310_v42, %v2326_v52 }
  0x94   : > { %v578_v11 = vadd.f32 %v546_v0, %v510_v63  ;;  %v1273_v14 = vrot.slane %v883_v3, 1  ;;  %v685_v15 = vmul.f32 %v2310_v42, %v2328_v53  ;;  %v736_v16 = vmul.f32 %v2320_v49, %v2375_v34  ;;  %v2491_v3 = vld [vmem:[#allocation2 + $0x78] sm:$0xff] }
  0x95   : > { %v1135_v13 = vadd.f32 %v1087_v62, %v1035_v4  ;;  %1604 = vst.msk [vmem:[%s2399_s24 + $0x10] sm:$0xff] %vm242_vm0, %v1572_v9  ;;  %v737_v18 = vmul.f32 %v2320_v49, %v2383_v56  ;;  %v836_v19 = vmul.f32 %v2322_v50, %v2434_v55  ;;  %v837_v20 = vmul.f32 %v2322_v50, %v2444_v7 }
  0x96   : > { %v646_v17 = vadd.f32 %v614_v8, %v578_v11  ;;  %v1274_v46 = vsel %vm1264_vm3, %v1271_v30, %v1273_v14  ;;  %v784_v22 = vadd.f32 %v736_v16, %v684_v12  ;;  %v936_v23 = vmul.f32 %v2312_v43, %v2326_v52 }
  0x97   : > { %v1466_v21 = vrot.slane %v1135_v13, 2  ;;  %v1380_v24 = vadd.f32 %v1274_v46, %v1187_v10  ;;  %v785_v25 = vadd.f32 %v737_v18, %v685_v15  ;;  %v937_v26 = vmul.f32 %v2312_v43, %v2328_v53  ;;  %v2500_v18 = vld [vmem:[#allocation2 + $0x80] sm:$0xff] }
  0x98   : > { %v988_v27 = vmul.f32 %v2347_v1, %v2375_v34  ;;  %v884_v29 = vadd.f32 %v836_v19, %v784_v22  ;;  %v989_v30 = vmul.f32 %v2347_v1, %v2383_v56  ;;  %v1088_v31 = vmul.f32 %v2349_v5, %v2434_v55 }
  0x99   : > { %v1467_v28 = vsel %vm1457_vm4, %v1464_v57, %v1466_v21  ;;  %v885_v52 = vadd.f32 %v837_v20, %v785_v25  ;;  %v1089_v35 = vmul.f32 %v2349_v5, %v2444_v7  ;;  %v1188_v40 = vadd.f32 %v2354_v6, %v646_v17 }
  0x9a   : > { %v1573_v32 = vadd.f32 %v1467_v28, %v1380_v24  ;;  %v1036_v33 = vadd.f32 %v988_v27, %v936_v23  ;;  %v1037_v39 = vadd.f32 %v989_v30, %v937_v26  ;;  %v1275_v44 = vrot.slane %v884_v29, 1 }
  0x9b   : > { %v511_v45 = vmul.f32 %v2308_v41, %v2328_v53  ;;  %v1276_v51 = vrot.slane %v885_v52, 1  ;;  %v547_v57 = vmul.f32 %v2316_v47, %v2383_v56  ;;  %v615_v58 = vmul.f32 %v2318_v48, %v2444_v7 }
  0x9c   : > { %1605 = vst.msk [vmem:[%s2399_s24 + $0x18] sm:$0xff] %vm242_vm0, %v1573_v32  ;;  %v1136_v54 = vadd.f32 %v1088_v31, %v1036_v33  ;;  %v1137_v59 = vadd.f32 %v1089_v35, %v1037_v39  ;;  %v686_v60 = vmul.f32 %v2310_v42, %v365_v36  ;;  %v738_v61 = vmul.f32 %v2320_v49, %v413_v37 }
  0x9d   : > { %v838_v62 = vmul.f32 %v2322_v50, %v462_v38  ;;  %v1277_v63 = vsel %vm1264_vm3, %v1275_v44, %v1276_v51  ;;  %v579_v0 = vadd.f32 %v547_v57, %v511_v45  ;;  %v938_v2 = vmul.f32 %v2312_v43, %v365_v36 }
  0x9e   : > { %v1468_v53 = vrot.slane %v1136_v54, 2  ;;  %v1381_v4 = vadd.f32 %v1277_v63, %v1188_v40  ;;  %v1469_v8 = vrot.slane %v1137_v59, 2  ;;  %v786_v9 = vadd.f32 %v738_v61, %v686_v60  ;;  %v416_v59 = vld [vmem:[#allocation2 + $0x70] sm:$0x3]  ;;  %v465_v60 = vld [vmem:[#allocation2 + $0x88] sm:$0x3] }
  0x9f   : > { %v990_v10 = vmul.f32 %v2347_v1, %v413_v37  ;;  %v647_v11 = vadd.f32 %v615_v58, %v579_v0  ;;  %v1090_v12 = vmul.f32 %v2349_v5, %v462_v38  ;;  %v512_v13 = vmul.f32 %v2308_v41, %v2375_v34  ;;  %v368_v58 = vld [vmem:[#allocation2 + $0x58] sm:$0x3] }
  0xa0   : > { %v548_v14 = vmul.f32 %v2316_v47, %v2434_v55  ;;  %v1470_v15 = vsel %vm1457_vm4, %v1468_v53, %v1469_v8  ;;  %v886_v16 = vadd.f32 %v838_v62, %v786_v9  ;;  %v616_v19 = vmul.f32 %v2318_v48, %v2491_v3 }
  0xa1   : > { %v1038_v17 = vadd.f32 %v990_v10, %v938_v2  ;;  %v1574_v20 = vadd.f32 %v1470_v15, %v1381_v4  ;;  %v1189_v46 = vadd.f32 %v2354_v6, %v647_v11  ;;  %v687_v22 = vmul.f32 %v2310_v42, %v2375_v34 }
  0xa2   : > { %v580_v21 = vadd.f32 %v548_v14, %v512_v13  ;;  %v1278_v24 = vrot.slane %v886_v16, 1  ;;  %v688_v25 = vmul.f32 %v2310_v42, %v2383_v56  ;;  %v739_v26 = vmul.f32 %v2320_v49, %v2434_v55  ;;  %v2547_v16 = vld [vmem:[#allocation2 + $0x90] sm:$0xff] }
  0xa3   : > { %v1138_v23 = vadd.f32 %v1090_v12, %v1038_v17  ;;  %1606 = vst.msk [vmem:[%s2399_s24 + $0x20] sm:$0xff] %vm242_vm0, %v1574_v20  ;;  %v740_v28 = vmul.f32 %v2320_v49, %v2444_v7  ;;  %v839_v29 = vmul.f32 %v2322_v50, %v2491_v3  ;;  %v840_v30 = vmul.f32 %v2322_v50, %v2500_v18 }
  0xa4   : > { %v648_v27 = vadd.f32 %v616_v19, %v580_v21  ;;  %v1279_v31 = vsel %vm1264_vm3, %v1276_v51, %v1278_v24  ;;  %v787_v52 = vadd.f32 %v739_v26, %v687_v22  ;;  %v939_v33 = vmul.f32 %v2312_v43, %v2375_v34 }
  0xa5   : > { %v1471_v32 = vrot.slane %v1138_v23, 2  ;;  %v1382_v35 = vadd.f32 %v1279_v31, %v1189_v46  ;;  %v788_v36 = vadd.f32 %v740_v28, %v688_v25  ;;  %v940_v37 = vmul.f32 %v2312_v43, %v2383_v56  ;;  %v2556_v28 = vld [vmem:[#allocation2 + $0x98] sm:$0xff] }
  0xa6   : > { %v991_v38 = vmul.f32 %v2347_v1, %v2434_v55  ;;  %v887_v40 = vadd.f32 %v839_v29, %v787_v52  ;;  %v992_v44 = vmul.f32 %v2347_v1, %v2444_v7  ;;  %v1091_v45 = vmul.f32 %v2349_v5, %v2491_v3 }
  0xa7   : > { %v1472_v39 = vsel %vm1457_vm4, %v1469_v8, %v1471_v32  ;;  %v888_v34 = vadd.f32 %v840_v30, %v788_v36  ;;  %v1092_v57 = vmul.f32 %v2349_v5, %v2500_v18  ;;  %v1190_v62 = vadd.f32 %v2354_v6, %v648_v27 }
  0xa8   : > { %v1575_v54 = vadd.f32 %v1472_v39, %v1382_v35  ;;  %v1039_v51 = vadd.f32 %v991_v38, %v939_v33  ;;  %v1040_v61 = vadd.f32 %v992_v44, %v940_v37  ;;  %v1280_v63 = vrot.slane %v887_v40, 1 }
  0xa9   : > { %v513_v53 = vmul.f32 %v2308_v41, %v2383_v56  ;;  %v1281_v2 = vrot.slane %v888_v34, 1  ;;  %v549_v4 = vmul.f32 %v2316_v47, %v2444_v7  ;;  %v617_v8 = vmul.f32 %v2318_v48, %v2500_v18 }
  0xaa   : > { %1607 = vst.msk [vmem:[%s2399_s24 + $0x28] sm:$0xff] %vm242_vm0, %v1575_v54  ;;  %v1139_v0 = vadd.f32 %v1091_v45, %v1039_v51  ;;  %v1140_v9 = vadd.f32 %v1092_v57, %v1040_v61  ;;  %v689_v10 = vmul.f32 %v2310_v42, %v368_v58  ;;  %v741_v11 = vmul.f32 %v2320_v49, %v416_v59 }
  0xab   : > { %v841_v12 = vmul.f32 %v2322_v50, %v465_v60  ;;  %v1282_v13 = vsel %vm1264_vm3, %v1280_v63, %v1281_v2  ;;  %v581_v14 = vadd.f32 %v549_v4, %v513_v53  ;;  %v941_v15 = vmul.f32 %v2312_v43, %v368_v58 }
  0xac   : > { %v1473_v56 = vrot.slane %v1139_v0, 2  ;;  %v1383_v17 = vadd.f32 %v1282_v13, %v1190_v62  ;;  %v1474_v19 = vrot.slane %v1140_v9, 2  ;;  %v789_v20 = vadd.f32 %v741_v11, %v689_v10  ;;  %v419_v9 = vld [vmem:[#allocation2 + $0x88] sm:$0x3]  ;;  %v468_v10 = vld [vmem:[#allocation2 + $0xa0] sm:$0x3] }
  0xad   : > { %v993_v46 = vmul.f32 %v2347_v1, %v416_v59  ;;  %v649_v21 = vadd.f32 %v617_v8, %v581_v14  ;;  %v1093_v22 = vmul.f32 %v2349_v5, %v465_v60  ;;  %v514_v23 = vmul.f32 %v2308_v41, %v2434_v55  ;;  %v371_v8 = vld [vmem:[#allocation2 + $0x70] sm:$0x3] }
  0xae   : > { %v550_v24 = vmul.f32 %v2316_v47, %v2491_v3  ;;  %v1475_v25 = vsel %vm1457_vm4, %v1473_v56, %v1474_v19  ;;  %v889_v26 = vadd.f32 %v841_v12, %v789_v20  ;;  %v618_v29 = vmul.f32 %v2318_v48, %v2547_v16 }
  0xaf   : > { %v1041_v27 = vadd.f32 %v993_v46, %v941_v15  ;;  %v1576_v30 = vadd.f32 %v1475_v25, %v1383_v17  ;;  %v1191_v31 = vadd.f32 %v2354_v6, %v649_v21  ;;  %v690_v52 = vmul.f32 %v2310_v42, %v2434_v55 }
  0xb0   : > { %v582_v32 = vadd.f32 %v550_v24, %v514_v23  ;;  %v1283_v35 = vrot.slane %v889_v26, 1  ;;  %v691_v36 = vmul.f32 %v2310_v42, %v2444_v7  ;;  %v742_v37 = vmul.f32 %v2320_v49, %v2491_v3  ;;  %v2603_v26 = vld [vmem:[#allocation2 + $0xa8] sm:$0xff] }
  0xb1   : > { %v1141_v33 = vadd.f32 %v1093_v22, %v1041_v27  ;;  %1608 = vst.msk [vmem:[%s2399_s24 + $0x30] sm:$0xff] %vm242_vm0, %v1576_v30  ;;  %v743_v39 = vmul.f32 %v2320_v49, %v2500_v18  ;;  %v842_v40 = vmul.f32 %v2322_v50, %v2547_v16  ;;  %v843_v44 = vmul.f32 %v2322_v50, %v2556_v28 }
  0xb2   : > { %v650_v38 = vadd.f32 %v618_v29, %v582_v32  ;;  %v1284_v45 = vsel %vm1264_vm3, %v1281_v2, %v1283_v35  ;;  %v790_v34 = vadd.f32 %v742_v37, %v690_v52  ;;  %v942_v51 = vmul.f32 %v2312_v43, %v2434_v55 }
  0xb3   : > { %v1476_v54 = vrot.slane %v1141_v33, 2  ;;  %v1384_v57 = vadd.f32 %v1284_v45, %v1191_v31  ;;  %v791_v58 = vadd.f32 %v743_v39, %v691_v36  ;;  %v943_v59 = vmul.f32 %v2312_v43, %v2444_v7  ;;  %v2612_v39 = vld [vmem:[#allocation2 + $0xb0] sm:$0xff] }
  0xb4   : > { %v994_v60 = vmul.f32 %v2347_v1, %v2491_v3  ;;  %v890_v62 = vadd.f32 %v842_v40, %v790_v34  ;;  %v995_v63 = vmul.f32 %v2347_v1, %v2500_v18  ;;  %v1094_v53 = vmul.f32 %v2349_v5, %v2547_v16 }
  0xb5   : > { %v1477_v61 = vsel %vm1457_vm4, %v1474_v19, %v1476_v54  ;;  %v891_v55 = vadd.f32 %v843_v44, %v791_v58  ;;  %v1095_v4 = vmul.f32 %v2349_v5, %v2556_v28  ;;  %v1192_v12 = vadd.f32 %v2354_v6, %v650_v38 }
  0xb6   : > { %v1577_v0 = vadd.f32 %v1477_v61, %v1384_v57  ;;  %v1042_v2 = vadd.f32 %v994_v60, %v942_v51  ;;  %v1043_v11 = vadd.f32 %v995_v63, %v943_v59  ;;  %v1285_v13 = vrot.slane %v890_v62, 1 }
  0xb7   : > { %v515_v56 = vmul.f32 %v2308_v41, %v2444_v7  ;;  %v1286_v15 = vrot.slane %v891_v55, 1  ;;  %v551_v17 = vmul.f32 %v2316_v47, %v2500_v18  ;;  %v619_v19 = vmul.f32 %v2318_v48, %v2556_v28 }
  0xb8   : > { %1609 = vst.msk [vmem:[%s2399_s24 + $0x38] sm:$0xff] %vm242_vm0, %v1577_v0  ;;  %v1142_v14 = vadd.f32 %v1094_v53, %v1042_v2  ;;  %v1143_v20 = vadd.f32 %v1095_v4, %v1043_v11  ;;  %v692_v46 = vmul.f32 %v2310_v42, %v371_v8  ;;  %v744_v21 = vmul.f32 %v2320_v49, %v419_v9 }
  0xb9   : > { %v844_v22 = vmul.f32 %v2322_v50, %v468_v10  ;;  %v1287_v23 = vsel %vm1264_vm3, %v1285_v13, %v1286_v15  ;;  %v583_v24 = vadd.f32 %v551_v17, %v515_v56  ;;  %v944_v25 = vmul.f32 %v2312_v43, %v371_v8 }
  0xba   : > { %v1478_v7 = vrot.slane %v1142_v14, 2  ;;  %v1385_v27 = vadd.f32 %v1287_v23, %v1192_v12  ;;  %v1479_v29 = vrot.slane %v1143_v20, 2  ;;  %v792_v30 = vadd.f32 %v744_v21, %v692_v46  ;;  %v422_v20 = vld [vmem:[#allocation2 + $0xa0] sm:$0x3]  ;;  %v471_v46 = vld [vmem:[#allocation2 + $0xb8] sm:$0x3] }
  0xbb   : > { %v996_v31 = vmul.f32 %v2347_v1, %v419_v9  ;;  %v651_v32 = vadd.f32 %v619_v19, %v583_v24  ;;  %v1096_v52 = vmul.f32 %v2349_v5, %v468_v10  ;;  %v516_v33 = vmul.f32 %v2308_v41, %v2491_v3  ;;  %v374_v19 = vld [vmem:[#allocation2 + $0x88] sm:$0x3] }
  0xbc   : > { %v552_v35 = vmul.f32 %v2316_v47, %v2547_v16  ;;  %v1480_v36 = vsel %vm1457_vm4, %v1478_v7, %v1479_v29  ;;  %v892_v37 = vadd.f32 %v844_v22, %v792_v30  ;;  %v620_v40 = vmul.f32 %v2318_v48, %v2603_v26 }
  0xbd   : > { %v1044_v38 = vadd.f32 %v996_v31, %v944_v25  ;;  %v1578_v44 = vadd.f32 %v1480_v36, %v1385_v27  ;;  %v1193_v45 = vadd.f32 %v2354_v6, %v651_v32  ;;  %v693_v34 = vmul.f32 %v2310_v42, %v2491_v3 }
  0xbe   : > { %v584_v54 = vadd.f32 %v552_v35, %v516_v33  ;;  %v1288_v57 = vrot.slane %v892_v37, 1  ;;  %v694_v58 = vmul.f32 %v2310_v42, %v2500_v18  ;;  %v745_v59 = vmul.f32 %v2320_v49, %v2547_v16  ;;  %v2659_v37 = vld [vmem:[#allocation2 + $0xc0] sm:$0xff] }
  0xbf   : > { %v1144_v51 = vadd.f32 %v1096_v52, %v1044_v38  ;;  %1610 = vst.msk [vmem:[%s2399_s24 + $0x40] sm:$0xff] %vm242_vm0, %v1578_v44  ;;  %v746_v61 = vmul.f32 %v2320_v49, %v2556_v28  ;;  %v845_v62 = vmul.f32 %v2322_v50, %v2603_v26  ;;  %v846_v63 = vmul.f32 %v2322_v50, %v2612_v39 }
  0xc0   : > { %v652_v60 = vadd.f32 %v620_v40, %v584_v54  ;;  %v1289_v53 = vsel %vm1264_vm3, %v1286_v15, %v1288_v57  ;;  %v793_v55 = vadd.f32 %v745_v59, %v693_v34  ;;  %v945_v2 = vmul.f32 %v2312_v43, %v2491_v3 }
  0xc1   : > { %v1481_v0 = vrot.slane %v1144_v51, 2  ;;  %v1386_v4 = vadd.f32 %v1289_v53, %v1193_v45  ;;  %v794_v8 = vadd.f32 %v746_v61, %v694_v58  ;;  %v946_v9 = vmul.f32 %v2312_v43, %v2500_v18  ;;  %v2668_v61 = vld [vmem:[#allocation2 + $0xc8] sm:$0xff] }
  0xc2   : > { %v997_v10 = vmul.f32 %v2347_v1, %v2547_v16  ;;  %v893_v12 = vadd.f32 %v845_v62, %v793_v55  ;;  %v998_v13 = vmul.f32 %v2347_v1, %v2556_v28  ;;  %v1097_v56 = vmul.f32 %v2349_v5, %v2603_v26 }
  0xc3   : > { %v1482_v11 = vsel %vm1457_vm4, %v1479_v29, %v1481_v0  ;;  %v894_v3 = vadd.f32 %v846_v63, %v794_v8  ;;  %v1098_v17 = vmul.f32 %v2349_v5, %v2612_v39  ;;  %v1194_v22 = vadd.f32 %v2354_v6, %v652_v60 }
  0xc4   : > { %v1579_v14 = vadd.f32 %v1482_v11, %v1386_v4  ;;  %v1045_v15 = vadd.f32 %v997_v10, %v945_v2  ;;  %v1046_v21 = vadd.f32 %v998_v13, %v946_v9  ;;  %v1290_v23 = vrot.slane %v893_v12, 1 }
  0xc5   : > { %v517_v7 = vmul.f32 %v2308_v41, %v2500_v18  ;;  %v1291_v25 = vrot.slane %v894_v3, 1  ;;  %v553_v27 = vmul.f32 %v2316_v47, %v2556_v28  ;;  %v621_v29 = vmul.f32 %v2318_v48, %v2612_v39 }
  0xc6   : > { %1611 = vst.msk [vmem:[%s2399_s24 + $0x48] sm:$0xff] %vm242_vm0, %v1579_v14  ;;  %v1145_v24 = vadd.f32 %v1097_v56, %v1045_v15  ;;  %v1146_v30 = vadd.f32 %v1098_v17, %v1046_v21  ;;  %v695_v31 = vmul.f32 %v2310_v42, %v374_v19  ;;  %v747_v32 = vmul.f32 %v2320_v49, %v422_v20 }
  0xc7   : > { %v847_v52 = vmul.f32 %v2322_v50, %v471_v46  ;;  %v1292_v33 = vsel %vm1264_vm3, %v1290_v23, %v1291_v25  ;;  %v585_v35 = vadd.f32 %v553_v27, %v517_v7  ;;  %v947_v36 = vmul.f32 %v2312_v43, %v374_v19 }
  0xc8   : > { %v1483_v18 = vrot.slane %v1145_v24, 2  ;;  %v1387_v38 = vadd.f32 %v1292_v33, %v1194_v22  ;;  %v1484_v40 = vrot.slane %v1146_v30, 2  ;;  %v795_v44 = vadd.f32 %v747_v32, %v695_v31  ;;  %v425_v30 = vld [vmem:[#allocation2 + $0xb8] sm:$0x3]  ;;  %v474_v31 = vld [vmem:[#allocation2 + $0xd0] sm:$0x3] }
  0xc9   : > { %v999_v45 = vmul.f32 %v2347_v1, %v422_v20  ;;  %v653_v54 = vadd.f32 %v621_v29, %v585_v35  ;;  %v1099_v34 = vmul.f32 %v2349_v5, %v471_v46  ;;  %v518_v51 = vmul.f32 %v2308_v41, %v2547_v16  ;;  %v377_v29 = vld [vmem:[#allocation2 + $0xa0] sm:$0x3] }
  0xca   : > { %v554_v57 = vmul.f32 %v2316_v47, %v2603_v26  ;;  %v1485_v58 = vsel %vm1457_vm4, %v1483_v18, %v1484_v40  ;;  %v895_v59 = vadd.f32 %v847_v52, %v795_v44  ;;  %v622_v62 = vmul.f32 %v2318_v48, %v2659_v37 }
  0xcb   : > { %v1047_v60 = vadd.f32 %v999_v45, %v947_v36  ;;  %v1580_v63 = vadd.f32 %v1485_v58, %v1387_v38  ;;  %v1195_v53 = vadd.f32 %v2354_v6, %v653_v54  ;;  %v696_v55 = vmul.f32 %v2310_v42, %v2547_v16 }
  0xcc   : > { %v586_v0 = vadd.f32 %v554_v57, %v518_v51  ;;  %v1293_v4 = vrot.slane %v895_v59, 1  ;;  %v697_v8 = vmul.f32 %v2310_v42, %v2556_v28  ;;  %v748_v9 = vmul.f32 %v2320_v49, %v2603_v26  ;;  %v2715_v59 = vld [vmem:[#allocation2 + $0xd8] sm:$0xff] }
  0xcd   : > { %v1147_v2 = vadd.f32 %v1099_v34, %v1047_v60  ;;  %1612 = vst.msk [vmem:[%s2399_s24 + $0x50] sm:$0xff] %vm242_vm0, %v1580_v63  ;;  %v749_v11 = vmul.f32 %v2320_v49, %v2612_v39  ;;  %v848_v12 = vmul.f32 %v2322_v50, %v2659_v37  ;;  %v849_v13 = vmul.f32 %v2322_v50, %v2668_v61 }
  0xce   : > { %v654_v10 = vadd.f32 %v622_v62, %v586_v0  ;;  %v1294_v56 = vsel %vm1264_vm3, %v1291_v25, %v1293_v4  ;;  %v796_v3 = vadd.f32 %v748_v9, %v696_v55  ;;  %v948_v15 = vmul.f32 %v2312_v43, %v2547_v16 }
  0xcf   : > { %v1486_v14 = vrot.slane %v1147_v2, 2  ;;  %v1388_v17 = vadd.f32 %v1294_v56, %v1195_v53  ;;  %v797_v19 = vadd.f32 %v749_v11, %v697_v8  ;;  %v949_v20 = vmul.f32 %v2312_v43, %v2556_v28  ;;  %v2724_v11 = vld [vmem:[#allocation2 + $0xe0] sm:$0xff] }
  0xd0   : > { %v1000_v46 = vmul.f32 %v2347_v1, %v2603_v26  ;;  %v896_v22 = vadd.f32 %v848_v12, %v796_v3  ;;  %v1001_v23 = vmul.f32 %v2347_v1, %v2612_v39  ;;  %v1100_v7 = vmul.f32 %v2349_v5, %v2659_v37 }
  0xd1   : > { %v1487_v21 = vsel %vm1457_vm4, %v1484_v40, %v1486_v14  ;;  %v897_v16 = vadd.f32 %v849_v13, %v797_v19  ;;  %v1101_v27 = vmul.f32 %v2349_v5, %v2668_v61  ;;  %v1196_v52 = vadd.f32 %v2354_v6, %v654_v10 }
  0xd2   : > { %v1581_v24 = vadd.f32 %v1487_v21, %v1388_v17  ;;  %v1048_v25 = vadd.f32 %v1000_v46, %v948_v15  ;;  %v1049_v32 = vadd.f32 %v1001_v23, %v949_v20  ;;  %v1295_v33 = vrot.slane %v896_v22, 1 }
  0xd3   : > { %v519_v18 = vmul.f32 %v2308_v41, %v2556_v28  ;;  %v1296_v36 = vrot.slane %v897_v16, 1  ;;  %v555_v38 = vmul.f32 %v2316_v47, %v2612_v39  ;;  %v623_v40 = vmul.f32 %v2318_v48, %v2668_v61 }
  0xd4   : > { %1613 = vst.msk [vmem:[%s2399_s24 + $0x58] sm:$0xff] %vm242_vm0, %v1581_v24  ;;  %v1148_v35 = vadd.f32 %v1100_v7, %v1048_v25  ;;  %v1149_v44 = vadd.f32 %v1101_v27, %v1049_v32  ;;  %v698_v45 = vmul.f32 %v2310_v42, %v377_v29  ;;  %v750_v54 = vmul.f32 %v2320_v49, %v425_v30 }
  0xd5   : > { %v850_v34 = vmul.f32 %v2322_v50, %v474_v31  ;;  %v1297_v51 = vsel %vm1264_vm3, %v1295_v33, %v1296_v36  ;;  %v587_v57 = vadd.f32 %v555_v38, %v519_v18  ;;  %v950_v58 = vmul.f32 %v2312_v43, %v377_v29 }
  0xd6   : > { %v1488_v28 = vrot.slane %v1148_v35, 2  ;;  %v1389_v60 = vadd.f32 %v1297_v51, %v1196_v52  ;;  %v1489_v62 = vrot.slane %v1149_v44, 2  ;;  %v798_v63 = vadd.f32 %v750_v54, %v698_v45  ;;  %v428_v44 = vld [vmem:[#allocation2 + $0xd0] sm:$0x3]  ;;  %v477_v45 = vld [vmem:[#allocation2 + $0xe8] sm:$0x3] }
  0xd7   : > { %v1002_v53 = vmul.f32 %v2347_v1, %v425_v30  ;;  %v655_v0 = vadd.f32 %v623_v40, %v587_v57  ;;  %v1102_v55 = vmul.f32 %v2349_v5, %v474_v31  ;;  %v520_v2 = vmul.f32 %v2308_v41, %v2603_v26  ;;  %v380_v40 = vld [vmem:[#allocation2 + $0xb8] sm:$0x3] }
  0xd8   : > { %v556_v4 = vmul.f32 %v2316_v47, %v2659_v37  ;;  %v1490_v8 = vsel %vm1457_vm4, %v1488_v28, %v1489_v62  ;;  %v898_v9 = vadd.f32 %v850_v34, %v798_v63  ;;  %v624_v12 = vmul.f32 %v2318_v48, %v2715_v59 }
  0xd9   : > { %v1050_v10 = vadd.f32 %v1002_v53, %v950_v58  ;;  %v1582_v13 = vadd.f32 %v1490_v8, %v1389_v60  ;;  %v1197_v56 = vadd.f32 %v2354_v6, %v655_v0  ;;  %v699_v3 = vmul.f32 %v2310_v42, %v2603_v26 }
  0xda   : > { %v588_v14 = vadd.f32 %v556_v4, %v520_v2  ;;  %v1298_v17 = vrot.slane %v898_v9, 1  ;;  %v700_v19 = vmul.f32 %v2310_v42, %v2612_v39  ;;  %v751_v20 = vmul.f32 %v2320_v49, %v2659_v37  ;;  %v2771_v9 = vld [vmem:[#allocation2 + $0xf0] sm:$0xff] }
  0xdb   : > { %v1150_v15 = vadd.f32 %v1102_v55, %v1050_v10  ;;  %1614 = vst.msk [vmem:[%s2399_s24 + $0x60] sm:$0xff] %vm242_vm0, %v1582_v13  ;;  %v752_v21 = vmul.f32 %v2320_v49, %v2668_v61  ;;  %v851_v22 = vmul.f32 %v2322_v50, %v2715_v59  ;;  %v852_v23 = vmul.f32 %v2322_v50, %v2724_v11 }
  0xdc   : > { %v656_v46 = vadd.f32 %v624_v12, %v588_v14  ;;  %v1299_v7 = vsel %vm1264_vm3, %v1296_v36, %v1298_v17  ;;  %v799_v16 = vadd.f32 %v751_v20, %v699_v3  ;;  %v951_v25 = vmul.f32 %v2312_v43, %v2603_v26 }
  0xdd   : > { %v1491_v24 = vrot.slane %v1150_v15, 2  ;;  %v1390_v27 = vadd.f32 %v1299_v7, %v1197_v56  ;;  %v800_v29 = vadd.f32 %v752_v21, %v700_v19  ;;  %v952_v30 = vmul.f32 %v2312_v43, %v2612_v39  ;;  %v2780_v21 = vld [vmem:[#allocation2 + $0xf8] sm:$0xff] }
  0xde   : > { %v1003_v31 = vmul.f32 %v2347_v1, %v2659_v37  ;;  %v899_v52 = vadd.f32 %v851_v22, %v799_v16  ;;  %v1004_v33 = vmul.f32 %v2347_v1, %v2668_v61  ;;  %v1103_v18 = vmul.f32 %v2349_v5, %v2715_v59 }
  0xdf   : > { %v1492_v32 = vsel %vm1457_vm4, %v1489_v62, %v1491_v24  ;;  %v900_v26 = vadd.f32 %v852_v23, %v800_v29  ;;  %v1104_v38 = vmul.f32 %v2349_v5, %v2724_v11  ;;  %v1198_v34 = vadd.f32 %v2354_v6, %v656_v46 }
  0xe0   : > { %v1583_v35 = vadd.f32 %v1492_v32, %v1390_v27  ;;  %v1051_v36 = vadd.f32 %v1003_v31, %v951_v25  ;;  %v1052_v54 = vadd.f32 %v1004_v33, %v952_v30  ;;  %v1300_v51 = vrot.slane %v899_v52, 1 }
  0xe1   : > { %v521_v28 = vmul.f32 %v2308_v41, %v2612_v39  ;;  %v1301_v58 = vrot.slane %v900_v26, 1  ;;  %v557_v60 = vmul.f32 %v2316_v47, %v2668_v61  ;;  %v625_v62 = vmul.f32 %v2318_v48, %v2724_v11 }
  0xe2   : > { %1615 = vst.msk [vmem:[%s2399_s24 + $0x68] sm:$0xff] %vm242_vm0, %v1583_v35  ;;  %v1151_v57 = vadd.f32 %v1103_v18, %v1051_v36  ;;  %v1152_v63 = vadd.f32 %v1104_v38, %v1052_v54  ;;  %v701_v53 = vmul.f32 %v2310_v42, %v380_v40  ;;  %v753_v0 = vmul.f32 %v2320_v49, %v428_v44 }
  0xe3   : > { %v853_v55 = vmul.f32 %v2322_v50, %v477_v45  ;;  %v1302_v2 = vsel %vm1264_vm3, %v1300_v51, %v1301_v58  ;;  %v589_v4 = vadd.f32 %v557_v60, %v521_v28  ;;  %v953_v8 = vmul.f32 %v2312_v43, %v380_v40  ;;  %v383_v60 = vld [vmem:[#allocation2 + $0xd0] sm:$0x3] }
  0xe4   : > { %v1493_v39 = vrot.slane %v1151_v57, 2  ;;  %v1391_v10 = vadd.f32 %v1302_v2, %v1198_v34  ;;  %v1494_v12 = vrot.slane %v1152_v63, 2  ;;  %v801_v13 = vadd.f32 %v753_v0, %v701_v53  ;;  %v480_v63 = vld [vmem:[#allocation2 + $0x100] sm:$0x3] }
  0xe5   : > { %v1005_v56 = vmul.f32 %v2347_v1, %v428_v44  ;;  %v657_v14 = vadd.f32 %v625_v62, %v589_v4  ;;  %v1105_v3 = vmul.f32 %v2349_v5, %v477_v45  ;;  %v522_v15 = vmul.f32 %v2308_v41, %v2659_v37  ;;  %v431_v62 = vld [vmem:[#allocation2 + $0xe8] sm:$0x3]  ;;  %v2816_v0 = vld [vmem:[%s3282_s2] ss:$0 sm:$0xff] }
  0xe6   : > { %v558_v17 = vmul.f32 %v2316_v47, %v2715_v59  ;;  %v1495_v19 = vsel %vm1457_vm4, %v1493_v39, %v1494_v12  ;;  %v901_v20 = vadd.f32 %v853_v55, %v801_v13  ;;  %v626_v22 = vmul.f32 %v2318_v48, %v2771_v9 }
  0xe7   : > { %v1053_v46 = vadd.f32 %v1005_v56, %v953_v8  ;;  %v1584_v23 = vadd.f32 %v1495_v19, %v1391_v10  ;;  %v1199_v7 = vadd.f32 %v2354_v6, %v657_v14  ;;  %v702_v16 = vmul.f32 %v2310_v42, %v2659_v37 }
  0xe8   : > { %v590_v24 = vadd.f32 %v558_v17, %v522_v15  ;;  %v1303_v27 = vrot.slane %v901_v20, 1  ;;  %v703_v29 = vmul.f32 %v2310_v42, %v2668_v61  ;;  %v754_v30 = vmul.f32 %v2320_v49, %v2715_v59  ;;  %v2832_v20 = vld [vmem:[#allocation2 + $0x108] sm:$0xff] }
  0xe9   : > { %v1153_v25 = vadd.f32 %v1105_v3, %v1053_v46  ;;  %1616 = vst.msk [vmem:[%s2399_s24 + $0x70] sm:$0xff] %vm242_vm0, %v1584_v23  ;;  %v755_v32 = vmul.f32 %v2320_v49, %v2724_v11  ;;  %v854_v6 = vmul.f32 %v2322_v50, %v2771_v9  ;;  %v855_v52 = vmul.f32 %v2322_v50, %v2780_v21 }
  0xea   : > { %v658_v31 = vadd.f32 %v626_v22, %v590_v24  ;;  %v1304_v33 = vsel %vm1264_vm3, %v1301_v58, %v1303_v27  ;;  %v802_v35 = vadd.f32 %v754_v30, %v702_v16  ;;  %v954_v26 = vmul.f32 %v2312_v43, %v2659_v37 }
  0xeb   : > { %v1496_v18 = vrot.slane %v1153_v25, 2  ;;  %v1392_v36 = vadd.f32 %v1304_v33, %v1199_v7  ;;  %v803_v38 = vadd.f32 %v755_v32, %v703_v29  ;;  %v955_v40 = vmul.f32 %v2312_v43, %v2668_v61  ;;  %v2841_v32 = vld [vmem:[#allocation2 + $0x110] sm:$0xff] }
  0xec   : > { %v1006_v44 = vmul.f32 %v2347_v1, %v2715_v59  ;;  %v902_v54 = vadd.f32 %v854_v6, %v802_v35  ;;  %v1007_v34 = vmul.f32 %v2347_v1, %v2724_v11  ;;  %v1106_v51 = vmul.f32 %v2349_v5, %v2771_v9 }
  0xed   : > { %v1497_v45 = vsel %vm1457_vm4, %v1494_v12, %v1496_v18  ;;  %v903_v37 = vadd.f32 %v855_v52, %v803_v38  ;;  %v1107_v58 = vmul.f32 %v2349_v5, %v2780_v21  ;;  %v1200_v55 = vadd.f32 %v2816_v0, %v658_v31 }
  0xee   : > { %v1585_v28 = vadd.f32 %v1497_v45, %v1392_v36  ;;  %v1054_v57 = vadd.f32 %v1006_v44, %v954_v26  ;;  %v1055_v53 = vadd.f32 %v1007_v34, %v955_v40  ;;  %v1305_v2 = vrot.slane %v902_v54, 1 }
  0xef   : > { %v523_v39 = vmul.f32 %v2308_v41, %v2668_v61  ;;  %v1306_v8 = vrot.slane %v903_v37, 1  ;;  %v559_v10 = vmul.f32 %v2316_v47, %v2724_v11  ;;  %v627_v12 = vmul.f32 %v2318_v48, %v2780_v21 }
  0xf0   : > { %1617 = vst.msk [vmem:[%s2399_s24 + $0x78] sm:$0xff] %vm242_vm0, %v1585_v28  ;;  %v1154_v4 = vadd.f32 %v1106_v51, %v1054_v57  ;;  %v1155_v13 = vadd.f32 %v1107_v58, %v1055_v53  ;;  %v704_v56 = vmul.f32 %v2310_v42, %v383_v60  ;;  %v756_v14 = vmul.f32 %v2320_v49, %v431_v62 }
  0xf1   : > { %v856_v3 = vmul.f32 %v2322_v50, %v480_v63  ;;  %v1307_v15 = vsel %vm1264_vm3, %v1305_v2, %v1306_v8  ;;  %v591_v17 = vadd.f32 %v559_v10, %v523_v39  ;;  %v956_v19 = vmul.f32 %v2312_v43, %v383_v60 }
  0xf2   : > { %v1498_v61 = vrot.slane %v1154_v4, 2  ;;  %v1393_v46 = vadd.f32 %v1307_v15, %v1200_v55  ;;  %v1499_v22 = vrot.slane %v1155_v13, 2  ;;  %v804_v23 = vadd.f32 %v756_v14, %v704_v56  ;;  %v434_v13 = vld [vmem:[#allocation2 + $0x100] sm:$0x3]  ;;  %v483_v56 = vld [vmem:[#allocation2 + $0x118] sm:$0x3] }
  0xf3   : > { %v1008_v7 = vmul.f32 %v2347_v1, %v431_v62  ;;  %v659_v24 = vadd.f32 %v627_v12, %v591_v17  ;;  %v1108_v16 = vmul.f32 %v2349_v5, %v480_v63  ;;  %v524_v25 = vmul.f32 %v2308_v41, %v2715_v59  ;;  %v386_v12 = vld [vmem:[#allocation2 + $0xe8] sm:$0x3] }
  0xf4   : > { %v560_v27 = vmul.f32 %v2316_v47, %v2771_v9  ;;  %v1500_v29 = vsel %vm1457_vm4, %v1498_v61, %v1499_v22  ;;  %v904_v30 = vadd.f32 %v856_v3, %v804_v23  ;;  %v628_v6 = vmul.f32 %v2318_v48, %v2832_v20 }
  0xf5   : > { %v1056_v31 = vadd.f32 %v1008_v7, %v956_v19  ;;  %v1586_v52 = vadd.f32 %v1500_v29, %v1393_v46  ;;  %v1201_v33 = vadd.f32 %v2816_v0, %v659_v24  ;;  %v705_v35 = vmul.f32 %v2310_v42, %v2715_v59 }
  0xf6   : > { %v592_v18 = vadd.f32 %v560_v27, %v524_v25  ;;  %v1308_v36 = vrot.slane %v904_v30, 1  ;;  %v706_v38 = vmul.f32 %v2310_v42, %v2724_v11  ;;  %v757_v40 = vmul.f32 %v2320_v49, %v2771_v9  ;;  %v2888_v30 = vld [vmem:[#allocation2 + $0x120] sm:$0xff] }
  0xf7   : > { %v1156_v26 = vadd.f32 %v1108_v16, %v1056_v31  ;;  %1618 = vst.msk [vmem:[%s2399_s24 + $0x80] sm:$0xff] %vm242_vm0, %v1586_v52  ;;  %v758_v45 = vmul.f32 %v2320_v49, %v2780_v21  ;;  %v857_v54 = vmul.f32 %v2322_v50, %v2832_v20  ;;  %v858_v34 = vmul.f32 %v2322_v50, %v2841_v32 }
  0xf8   : > { %v660_v44 = vadd.f32 %v628_v6, %v592_v18  ;;  %v1309_v51 = vsel %vm1264_vm3, %v1306_v8, %v1308_v36  ;;  %v805_v37 = vadd.f32 %v757_v40, %v705_v35  ;;  %v957_v57 = vmul.f32 %v2312_v43, %v2715_v59 }
  0xf9   : > { %v1501_v28 = vrot.slane %v1156_v26, 2  ;;  %v1394_v58 = vadd.f32 %v1309_v51, %v1201_v33  ;;  %v806_v60 = vadd.f32 %v758_v45, %v706_v38  ;;  %v958_v62 = vmul.f32 %v2312_v43, %v2724_v11  ;;  %v2897_v45 = vld [vmem:[#allocation2 + $0x128] sm:$0xff] }
  0xfa   : > { %v1009_v63 = vmul.f32 %v2347_v1, %v2771_v9  ;;  %v905_v55 = vadd.f32 %v857_v54, %v805_v37  ;;  %v1010_v2 = vmul.f32 %v2347_v1, %v2780_v21  ;;  %v1109_v39 = vmul.f32 %v2349_v5, %v2832_v20 }
  0xfb   : > { %v1502_v53 = vsel %vm1457_vm4, %v1499_v22, %v1501_v28  ;;  %v906_v59 = vadd.f32 %v858_v34, %v806_v60  ;;  %v1110_v10 = vmul.f32 %v2349_v5, %v2841_v32  ;;  %v1202_v3 = vadd.f32 %v2816_v0, %v660_v44 }
  0xfc   : > { %v1587_v4 = vadd.f32 %v1502_v53, %v1394_v58  ;;  %v1057_v8 = vadd.f32 %v1009_v63, %v957_v57  ;;  %v1058_v14 = vadd.f32 %v1010_v2, %v958_v62  ;;  %v1310_v15 = vrot.slane %v905_v55, 1 }
  0xfd   : > { %v525_v61 = vmul.f32 %v2308_v41, %v2724_v11  ;;  %v1311_v19 = vrot.slane %v906_v59, 1  ;;  %v561_v46 = vmul.f32 %v2316_v47, %v2780_v21  ;;  %v629_v22 = vmul.f32 %v2318_v48, %v2841_v32 }
  0xfe   : > { %1619 = vst.msk [vmem:[%s2399_s24 + $0x88] sm:$0xff] %vm242_vm0, %v1587_v4  ;;  %v1157_v17 = vadd.f32 %v1109_v39, %v1057_v8  ;;  %v1158_v23 = vadd.f32 %v1110_v10, %v1058_v14  ;;  %v707_v7 = vmul.f32 %v2310_v42, %v386_v12  ;;  %v759_v24 = vmul.f32 %v2320_v49, %v434_v13 }
  0xff   : > { %v859_v16 = vmul.f32 %v2322_v50, %v483_v56  ;;  %v1312_v25 = vsel %vm1264_vm3, %v1310_v15, %v1311_v19  ;;  %v593_v27 = vadd.f32 %v561_v46, %v525_v61  ;;  %v959_v29 = vmul.f32 %v2312_v43, %v386_v12 }
 0x100   : > { %v1503_v11 = vrot.slane %v1157_v17, 2  ;;  %v1395_v31 = vadd.f32 %v1312_v25, %v1202_v3  ;;  %v1504_v6 = vrot.slane %v1158_v23, 2  ;;  %v807_v52 = vadd.f32 %v759_v24, %v707_v7  ;;  %v437_v23 = vld [vmem:[#allocation2 + $0x118] sm:$0x3]  ;;  %v486_v7 = vld [vmem:[#allocation2 + $0x130] sm:$0x3] }
 0x101   : > { %v1011_v33 = vmul.f32 %v2347_v1, %v434_v13  ;;  %v661_v18 = vadd.f32 %v629_v22, %v593_v27  ;;  %v1111_v35 = vmul.f32 %v2349_v5, %v483_v56  ;;  %v526_v26 = vmul.f32 %v2308_v41, %v2771_v9  ;;  %v389_v22 = vld [vmem:[#allocation2 + $0x100] sm:$0x3] }
 0x102   : > { %v562_v36 = vmul.f32 %v2316_v47, %v2832_v20  ;;  %v1505_v38 = vsel %vm1457_vm4, %v1503_v11, %v1504_v6  ;;  %v907_v40 = vadd.f32 %v859_v16, %v807_v52  ;;  %v630_v54 = vmul.f32 %v2318_v48, %v2888_v30 }
 0x103   : > { %v1059_v44 = vadd.f32 %v1011_v33, %v959_v29  ;;  %v1588_v34 = vadd.f32 %v1505_v38, %v1395_v31  ;;  %v1203_v51 = vadd.f32 %v2816_v0, %v661_v18  ;;  %v708_v37 = vmul.f32 %v2310_v42, %v2771_v9 }
 0x104   : > { %v594_v28 = vadd.f32 %v562_v36, %v526_v26  ;;  %v1313_v58 = vrot.slane %v907_v40, 1  ;;  %v709_v60 = vmul.f32 %v2310_v42, %v2780_v21  ;;  %v760_v62 = vmul.f32 %v2320_v49, %v2832_v20  ;;  %v2944_v40 = vld [vmem:[#allocation2 + $0x138] sm:$0xff] }
 0x105   : > { %v1159_v57 = vadd.f32 %v1111_v35, %v1059_v44  ;;  %1620 = vst.msk [vmem:[%s2399_s24 + $0x90] sm:$0xff] %vm242_vm0, %v1588_v34  ;;  %v761_v53 = vmul.f32 %v2320_v49, %v2841_v32  ;;  %v860_v55 = vmul.f32 %v2322_v50, %v2888_v30  ;;  %v861_v2 = vmul.f32 %v2322_v50, %v2897_v45 }
 0x106   : > { %v662_v63 = vadd.f32 %v630_v54, %v594_v28  ;;  %v1314_v39 = vsel %vm1264_vm3, %v1311_v19, %v1313_v58  ;;  %v808_v59 = vadd.f32 %v760_v62, %v708_v37  ;;  %v960_v8 = vmul.f32 %v2312_v43, %v2771_v9 }
 0x107   : > { %v1506_v4 = vrot.slane %v1159_v57, 2  ;;  %v1396_v10 = vadd.f32 %v1314_v39, %v1203_v51  ;;  %v809_v12 = vadd.f32 %v761_v53, %v709_v60  ;;  %v961_v13 = vmul.f32 %v2312_v43, %v2780_v21  ;;  %v2953_v53 = vld [vmem:[#allocation2 + $0x140] sm:$0xff] }
 0x108   : > { %v1012_v56 = vmul.f32 %v2347_v1, %v2832_v20  ;;  %v908_v3 = vadd.f32 %v860_v55, %v808_v59  ;;  %v1013_v15 = vmul.f32 %v2347_v1, %v2841_v32  ;;  %v1112_v61 = vmul.f32 %v2349_v5, %v2888_v30 }
 0x109   : > { %v1507_v14 = vsel %vm1457_vm4, %v1504_v6, %v1506_v4  ;;  %v909_v9 = vadd.f32 %v861_v2, %v809_v12  ;;  %v1113_v46 = vmul.f32 %v2349_v5, %v2897_v45  ;;  %v1204_v16 = vadd.f32 %v2816_v0, %v662_v63 }
 0x10a   : > { %v1589_v17 = vadd.f32 %v1507_v14, %v1396_v10  ;;  %v1060_v19 = vadd.f32 %v1012_v56, %v960_v8  ;;  %v1061_v24 = vadd.f32 %v1013_v15, %v961_v13  ;;  %v1315_v25 = vrot.slane %v908_v3, 1 }
 0x10b   : > { %v527_v11 = vmul.f32 %v2308_v41, %v2780_v21  ;;  %v1316_v29 = vrot.slane %v909_v9, 1  ;;  %v563_v31 = vmul.f32 %v2316_v47, %v2841_v32  ;;  %v631_v6 = vmul.f32 %v2318_v48, %v2897_v45 }
 0x10c   : > { %1621 = vst.msk [vmem:[%s2399_s24 + $0x98] sm:$0xff] %vm242_vm0, %v1589_v17  ;;  %v1160_v27 = vadd.f32 %v1112_v61, %v1060_v19  ;;  %v1161_v52 = vadd.f32 %v1113_v46, %v1061_v24  ;;  %v710_v33 = vmul.f32 %v2310_v42, %v389_v22  ;;  %v762_v18 = vmul.f32 %v2320_v49, %v437_v23 }
 0x10d   : > { %v862_v35 = vmul.f32 %v2322_v50, %v486_v7  ;;  %v1317_v26 = vsel %vm1264_vm3, %v1315_v25, %v1316_v29  ;;  %v595_v36 = vadd.f32 %v563_v31, %v527_v11  ;;  %v962_v38 = vmul.f32 %v2312_v43, %v389_v22 }
 0x10e   : > { %v1508_v21 = vrot.slane %v1160_v27, 2  ;;  %v1397_v44 = vadd.f32 %v1317_v26, %v1204_v16  ;;  %v1509_v54 = vrot.slane %v1161_v52, 2  ;;  %v810_v34 = vadd.f32 %v762_v18, %v710_v33  ;;  %v440_v52 = vld [vmem:[#allocation2 + $0x130] sm:$0x3]  ;;  %v489_v33 = vld [vmem:[#allocation2 + $0x148] sm:$0x3] }
 0x10f   : > { %v1014_v51 = vmul.f32 %v2347_v1, %v437_v23  ;;  %v663_v28 = vadd.f32 %v631_v6, %v595_v36  ;;  %v1114_v37 = vmul.f32 %v2349_v5, %v486_v7  ;;  %v528_v57 = vmul.f32 %v2308_v41, %v2832_v20  ;;  %v392_v6 = vld [vmem:[#allocation2 + $0x118] sm:$0x3] }
 0x110   : > { %v564_v58 = vmul.f32 %v2316_v47, %v2888_v30  ;;  %v1510_v60 = vsel %vm1457_vm4, %v1508_v21, %v1509_v54  ;;  %v910_v62 = vadd.f32 %v862_v35, %v810_v34  ;;  %v632_v55 = vmul.f32 %v2318_v48, %v2944_v40 }
 0x111   : > { %v1062_v63 = vadd.f32 %v1014_v51, %v962_v38  ;;  %v1590_v2 = vadd.f32 %v1510_v60, %v1397_v44  ;;  %v1205_v39 = vadd.f32 %v2816_v0, %v663_v28  ;;  %v711_v59 = vmul.f32 %v2310_v42, %v2832_v20 }
 0x112   : > { %v596_v4 = vadd.f32 %v564_v58, %v528_v57  ;;  %v1318_v10 = vrot.slane %v910_v62, 1  ;;  %v712_v12 = vmul.f32 %v2310_v42, %v2841_v32  ;;  %v763_v13 = vmul.f32 %v2320_v49, %v2888_v30  ;;  %v3000_v62 = vld [vmem:[#allocation2 + $0x150] sm:$0xff] }
 0x113   : > { %v1162_v8 = vadd.f32 %v1114_v37, %v1062_v63  ;;  %1622 = vst.msk [vmem:[%s2399_s24 + $0xa0] sm:$0xff] %vm242_vm0, %v1590_v2  ;;  %v764_v14 = vmul.f32 %v2320_v49, %v2897_v45  ;;  %v863_v3 = vmul.f32 %v2322_v50, %v2944_v40  ;;  %v864_v15 = vmul.f32 %v2322_v50, %v2953_v53 }
 0x114   : > { %v664_v56 = vadd.f32 %v632_v55, %v596_v4  ;;  %v1319_v61 = vsel %vm1264_vm3, %v1316_v29, %v1318_v10  ;;  %v811_v9 = vadd.f32 %v763_v13, %v711_v59  ;;  %v963_v19 = vmul.f32 %v2312_v43, %v2832_v20 }
 0x115   : > { %v1511_v17 = vrot.slane %v1162_v8, 2  ;;  %v1398_v46 = vadd.f32 %v1319_v61, %v1205_v39  ;;  %v812_v22 = vadd.f32 %v764_v14, %v712_v12  ;;  %v964_v23 = vmul.f32 %v2312_v43, %v2841_v32  ;;  %v3009_v14 = vld [vmem:[#allocation2 + $0x158] sm:$0xff] }
 0x116   : > { %v1015_v7 = vmul.f32 %v2347_v1, %v2888_v30  ;;  %v911_v16 = vadd.f32 %v863_v3, %v811_v9  ;;  %v1016_v25 = vmul.f32 %v2347_v1, %v2897_v45  ;;  %v1115_v11 = vmul.f32 %v2349_v5, %v2944_v40 }
 0x117   : > { %v1512_v24 = vsel %vm1457_vm4, %v1509_v54, %v1511_v17  ;;  %v912_v20 = vadd.f32 %v864_v15, %v812_v22  ;;  %v1116_v31 = vmul.f32 %v2349_v5, %v2953_v53  ;;  %v1206_v35 = vadd.f32 %v2816_v0, %v664_v56 }
 0x118   : > { %v1591_v27 = vadd.f32 %v1512_v24, %v1398_v46  ;;  %v1063_v29 = vadd.f32 %v1015_v7, %v963_v19  ;;  %v1064_v18 = vadd.f32 %v1016_v25, %v964_v23  ;;  %v1320_v26 = vrot.slane %v911_v16, 1 }
 0x119   : > { %v529_v21 = vmul.f32 %v2308_v41, %v2841_v32  ;;  %v1321_v38 = vrot.slane %v912_v20, 1  ;;  %v565_v44 = vmul.f32 %v2316_v47, %v2897_v45  ;;  %v633_v54 = vmul.f32 %v2318_v48, %v2953_v53 }
 0x11a   : > { %1623 = vst.msk [vmem:[%s2399_s24 + $0xa8] sm:$0xff] %vm242_vm0, %v1591_v27  ;;  %v1163_v36 = vadd.f32 %v1115_v11, %v1063_v29  ;;  %v1164_v34 = vadd.f32 %v1116_v31, %v1064_v18  ;;  %v713_v51 = vmul.f32 %v2310_v42, %v392_v6  ;;  %v765_v28 = vmul.f32 %v2320_v49, %v440_v52 }
 0x11b   : > { %v865_v37 = vmul.f32 %v2322_v50, %v489_v33  ;;  %v1322_v57 = vsel %vm1264_vm3, %v1320_v26, %v1321_v38  ;;  %v597_v58 = vadd.f32 %v565_v44, %v529_v21  ;;  %v965_v60 = vmul.f32 %v2312_v43, %v392_v6 }
 0x11c   : > { %v1513_v32 = vrot.slane %v1163_v36, 2  ;;  %v1399_v63 = vadd.f32 %v1322_v57, %v1206_v35  ;;  %v1514_v55 = vrot.slane %v1164_v34, 2  ;;  %v813_v2 = vadd.f32 %v765_v28, %v713_v51  ;;  %v443_v34 = vld [vmem:[#allocation2 + $0x148] sm:$0x3]  ;;  %v492_v51 = vld [vmem:[#allocation2 + $0x160] sm:$0x3] }
 0x11d   : > { %v1017_v39 = vmul.f32 %v2347_v1, %v440_v52  ;;  %v665_v4 = vadd.f32 %v633_v54, %v597_v58  ;;  %v1117_v59 = vmul.f32 %v2349_v5, %v489_v33  ;;  %v530_v8 = vmul.f32 %v2308_v41, %v2888_v30  ;;  %v395_v54 = vld [vmem:[#allocation2 + $0x130] sm:$0x3] }
 0x11e   : > { %v566_v10 = vmul.f32 %v2316_v47, %v2944_v40  ;;  %v1515_v12 = vsel %vm1457_vm4, %v1513_v32, %v1514_v55  ;;  %v913_v13 = vadd.f32 %v865_v37, %v813_v2  ;;  %v634_v3 = vmul.f32 %v2318_v48, %v3000_v62 }
 0x11f   : > { %v1065_v56 = vadd.f32 %v1017_v39, %v965_v60  ;;  %v1592_v15 = vadd.f32 %v1515_v12, %v1399_v63  ;;  %v1207_v61 = vadd.f32 %v2816_v0, %v665_v4  ;;  %v714_v9 = vmul.f32 %v2310_v42, %v2888_v30 }
 0x120   : > { %v598_v17 = vadd.f32 %v566_v10, %v530_v8  ;;  %v1323_v46 = vrot.slane %v913_v13, 1  ;;  %v715_v22 = vmul.f32 %v2310_v42, %v2897_v45  ;;  %v766_v23 = vmul.f32 %v2320_v49, %v2944_v40  ;;  %v3056_v13 = vld [vmem:[#allocation2 + $0x168] sm:$0xff] }
 0x121   : > { %v1165_v19 = vadd.f32 %v1117_v59, %v1065_v56  ;;  %1624 = vst.msk [vmem:[%s2399_s24 + $0xb0] sm:$0xff] %vm242_vm0, %v1592_v15  ;;  %v767_v24 = vmul.f32 %v2320_v49, %v2953_v53  ;;  %v866_v16 = vmul.f32 %v2322_v50, %v3000_v62  ;;  %v867_v25 = vmul.f32 %v2322_v50, %v3009_v14 }
 0x122   : > { %v666_v7 = vadd.f32 %v634_v3, %v598_v17  ;;  %v1324_v11 = vsel %vm1264_vm3, %v1321_v38, %v1323_v46  ;;  %v814_v20 = vadd.f32 %v766_v23, %v714_v9  ;;  %v966_v29 = vmul.f32 %v2312_v43, %v2888_v30 }
 0x123   : > { %v1516_v27 = vrot.slane %v1165_v19, 2  ;;  %v1400_v31 = vadd.f32 %v1324_v11, %v1207_v61  ;;  %v815_v6 = vadd.f32 %v767_v24, %v715_v22  ;;  %v967_v52 = vmul.f32 %v2312_v43, %v2897_v45  ;;  %v3065_v24 = vld [vmem:[#allocation2 + $0x170] sm:$0xff] }
 0x124   : > { %v1018_v33 = vmul.f32 %v2347_v1, %v2944_v40  ;;  %v914_v35 = vadd.f32 %v866_v16, %v814_v20  ;;  %v1019_v26 = vmul.f32 %v2347_v1, %v2953_v53  ;;  %v1118_v21 = vmul.f32 %v2349_v5, %v3000_v62 }
 0x125   : > { %v1517_v18 = vsel %vm1457_vm4, %v1514_v55, %v1516_v27  ;;  %v915_v30 = vadd.f32 %v867_v25, %v815_v6  ;;  %v1119_v44 = vmul.f32 %v2349_v5, %v3009_v14  ;;  %v1208_v37 = vadd.f32 %v2816_v0, %v666_v7 }
 0x126   : > { %v1593_v36 = vadd.f32 %v1517_v18, %v1400_v31  ;;  %v1066_v38 = vadd.f32 %v1018_v33, %v966_v29  ;;  %v1067_v28 = vadd.f32 %v1019_v26, %v967_v52  ;;  %v1325_v57 = vrot.slane %v914_v35, 1 }
 0x127   : > { %v531_v32 = vmul.f32 %v2308_v41, %v2897_v45  ;;  %v1326_v60 = vrot.slane %v915_v30, 1  ;;  %v567_v63 = vmul.f32 %v2316_v47, %v2953_v53  ;;  %v635_v55 = vmul.f32 %v2318_v48, %v3009_v14 }
 0x128   : > { %1625 = vst.msk [vmem:[%s2399_s24 + $0xb8] sm:$0xff] %vm242_vm0, %v1593_v36  ;;  %v1166_v58 = vadd.f32 %v1118_v21, %v1066_v38  ;;  %v1167_v2 = vadd.f32 %v1119_v44, %v1067_v28  ;;  %v716_v39 = vmul.f32 %v2310_v42, %v395_v54  ;;  %v768_v4 = vmul.f32 %v2320_v49, %v443_v34 }
 0x129   : > { %v868_v59 = vmul.f32 %v2322_v50, %v492_v51  ;;  %v1327_v8 = vsel %vm1264_vm3, %v1325_v57, %v1326_v60  ;;  %v599_v10 = vadd.f32 %v567_v63, %v531_v32  ;;  %v968_v12 = vmul.f32 %v2312_v43, %v395_v54 }
 0x12a   : > { %v1518_v45 = vrot.slane %v1166_v58, 2  ;;  %v1401_v56 = vadd.f32 %v1327_v8, %v1208_v37  ;;  %v1519_v3 = vrot.slane %v1167_v2, 2  ;;  %v816_v15 = vadd.f32 %v768_v4, %v716_v39  ;;  %v446_v2 = vld [vmem:[#allocation2 + $0x160] sm:$0x3]  ;;  %v495_v39 = vld [vmem:[#allocation2 + $0x178] sm:$0x3] }
 0x12b   : > { %v1020_v61 = vmul.f32 %v2347_v1, %v443_v34  ;;  %v667_v17 = vadd.f32 %v635_v55, %v599_v10  ;;  %v1120_v9 = vmul.f32 %v2349_v5, %v492_v51  ;;  %v532_v19 = vmul.f32 %v2308_v41, %v2944_v40  ;;  %v398_v55 = vld [vmem:[#allocation2 + $0x148] sm:$0x3] }
 0x12c   : > { %v568_v46 = vmul.f32 %v2316_v47, %v3000_v62  ;;  %v1520_v22 = vsel %vm1457_vm4, %v1518_v45, %v1519_v3  ;;  %v916_v23 = vadd.f32 %v868_v59, %v816_v15  ;;  %v636_v16 = vmul.f32 %v2318_v48, %v3056_v13 }
 0x12d   : > { %v1068_v7 = vadd.f32 %v1020_v61, %v968_v12  ;;  %v1594_v25 = vadd.f32 %v1520_v22, %v1401_v56  ;;  %v1209_v11 = vadd.f32 %v2816_v0, %v667_v17  ;;  %v717_v20 = vmul.f32 %v2310_v42, %v2944_v40 }
 0x12e   : > { %v600_v27 = vadd.f32 %v568_v46, %v532_v19  ;;  %v1328_v31 = vrot.slane %v916_v23, 1  ;;  %v718_v6 = vmul.f32 %v2310_v42, %v2953_v53  ;;  %v769_v52 = vmul.f32 %v2320_v49, %v3000_v62  ;;  %v3112_v23 = vld [vmem:[#allocation2 + $0x180] sm:$0xff] }
 0x12f   : > { %v1168_v29 = vadd.f32 %v1120_v9, %v1068_v7  ;;  %1626 = vst.msk [vmem:[%s2399_s24 + $0xc0] sm:$0xff] %vm242_vm0, %v1594_v25  ;;  %v770_v18 = vmul.f32 %v2320_v49, %v3009_v14  ;;  %v869_v35 = vmul.f32 %v2322_v50, %v3056_v13  ;;  %v870_v26 = vmul.f32 %v2322_v50, %v3065_v24 }
 0x130   : > { %v668_v33 = vadd.f32 %v636_v16, %v600_v27  ;;  %v1329_v21 = vsel %vm1264_vm3, %v1326_v60, %v1328_v31  ;;  %v817_v30 = vadd.f32 %v769_v52, %v717_v20  ;;  %v969_v38 = vmul.f32 %v2312_v43, %v2944_v40 }
 0x131   : > { %v1521_v36 = vrot.slane %v1168_v29, 2  ;;  %v1402_v44 = vadd.f32 %v1329_v21, %v1209_v11  ;;  %v818_v54 = vadd.f32 %v770_v18, %v718_v6  ;;  %v970_v34 = vmul.f32 %v2312_v43, %v2953_v53  ;;  %v3121_v18 = vld [vmem:[#allocation2 + $0x188] sm:$0xff] }
 0x132   : > { %v1021_v51 = vmul.f32 %v2347_v1, %v3000_v62  ;;  %v917_v37 = vadd.f32 %v869_v35, %v817_v30  ;;  %v1022_v57 = vmul.f32 %v2347_v1, %v3009_v14  ;;  %v1121_v32 = vmul.f32 %v2349_v5, %v3056_v13 }
 0x133   : > { %v1522_v28 = vsel %vm1457_vm4, %v1519_v3, %v1521_v36  ;;  %v918_v40 = vadd.f32 %v870_v26, %v818_v54  ;;  %v1122_v63 = vmul.f32 %v2349_v5, %v3065_v24  ;;  %v1210_v59 = vadd.f32 %v2816_v0, %v668_v33 }
 0x134   : > { %v1595_v58 = vadd.f32 %v1522_v28, %v1402_v44  ;;  %v1069_v60 = vadd.f32 %v1021_v51, %v969_v38  ;;  %v1070_v4 = vadd.f32 %v1022_v57, %v970_v34  ;;  %v1330_v8 = vrot.slane %v917_v37, 1 }
 0x135   : > { %v533_v45 = vmul.f32 %v2308_v41, %v2953_v53  ;;  %v1331_v12 = vrot.slane %v918_v40, 1  ;;  %v569_v56 = vmul.f32 %v2316_v47, %v3009_v14  ;;  %v637_v3 = vmul.f32 %v2318_v48, %v3065_v24 }
 0x136   : > { %1627 = vst.msk [vmem:[%s2399_s24 + $0xc8] sm:$0xff] %vm242_vm0, %v1595_v58  ;;  %v1169_v10 = vadd.f32 %v1121_v32, %v1069_v60  ;;  %v1170_v15 = vadd.f32 %v1122_v63, %v1070_v4  ;;  %v719_v61 = vmul.f32 %v2310_v42, %v398_v55  ;;  %v771_v17 = vmul.f32 %v2320_v49, %v446_v2 }
 0x137   : > { %v871_v9 = vmul.f32 %v2322_v50, %v495_v39  ;;  %v1332_v19 = vsel %vm1264_vm3, %v1330_v8, %v1331_v12  ;;  %v601_v46 = vadd.f32 %v569_v56, %v533_v45  ;;  %v971_v22 = vmul.f32 %v2312_v43, %v398_v55 }
 0x138   : > { %v1523_v53 = vrot.slane %v1169_v10, 2  ;;  %v1403_v7 = vadd.f32 %v1332_v19, %v1210_v59  ;;  %v1524_v16 = vrot.slane %v1170_v15, 2  ;;  %v819_v25 = vadd.f32 %v771_v17, %v719_v61  ;;  %v449_v15 = vld [vmem:[#allocation2 + $0x178] sm:$0x3]  ;;  %v498_v61 = vld [vmem:[#allocation2 + $0x190] sm:$0x3] }
 0x139   : > { %v1023_v11 = vmul.f32 %v2347_v1, %v446_v2  ;;  %v669_v27 = vadd.f32 %v637_v3, %v601_v46  ;;  %v1123_v20 = vmul.f32 %v2349_v5, %v495_v39  ;;  %v534_v29 = vmul.f32 %v2308_v41, %v3000_v62  ;;  %v401_v3 = vld [vmem:[#allocation2 + $0x160] sm:$0x3] }
 0x13a   : > { %v570_v31 = vmul.f32 %v2316_v47, %v3056_v13  ;;  %v1525_v6 = vsel %vm1457_vm4, %v1523_v53, %v1524_v16  ;;  %v919_v52 = vadd.f32 %v871_v9, %v819_v25  ;;  %v638_v35 = vmul.f32 %v2318_v48, %v3112_v23 }
 0x13b   : > { %v1071_v33 = vadd.f32 %v1023_v11, %v971_v22  ;;  %v1596_v26 = vadd.f32 %v1525_v6, %v1403_v7  ;;  %v1211_v21 = vadd.f32 %v2816_v0, %v669_v27  ;;  %v720_v30 = vmul.f32 %v2310_v42, %v3000_v62 }
 0x13c   : > { %v602_v36 = vadd.f32 %v570_v31, %v534_v29  ;;  %v1333_v44 = vrot.slane %v919_v52, 1  ;;  %v721_v54 = vmul.f32 %v2310_v42, %v3009_v14  ;;  %v772_v34 = vmul.f32 %v2320_v49, %v3056_v13  ;;  %v499_v52 = vld [vmem:[#allocation2 + $0x198] sm:$0xff] }
 0x13d   : > { %v1171_v38 = vadd.f32 %v1123_v20, %v1071_v33  ;;  %1628 = vst.msk [vmem:[%s2399_s24 + $0xd0] sm:$0xff] %vm242_vm0, %v1596_v26  ;;  %v773_v28 = vmul.f32 %v2320_v49, %v3065_v24  ;;  %v872_v37 = vmul.f32 %v2322_v50, %v3112_v23  ;;  %v873_v57 = vmul.f32 %v2322_v50, %v3121_v18 }
 0x13e   : > { %v670_v51 = vadd.f32 %v638_v35, %v602_v36  ;;  %v1334_v32 = vsel %vm1264_vm3, %v1331_v12, %v1333_v44  ;;  %v820_v40 = vadd.f32 %v772_v34, %v720_v30  ;;  %v972_v60 = vmul.f32 %v2312_v43, %v3000_v62 }
 0x13f   : > { %v1526_v58 = vrot.slane %v1171_v38, 2  ;;  %v1404_v63 = vadd.f32 %v1334_v32, %v1211_v21  ;;  %v821_v55 = vadd.f32 %v773_v28, %v721_v54  ;;  %v973_v2 = vmul.f32 %v2312_v43, %v3009_v14  ;;  %v500_v28 = vld [vmem:[#allocation2 + $0x1a0] sm:$0xff] }
 0x140   : > { %v1024_v39 = vmul.f32 %v2347_v1, %v3056_v13  ;;  %v920_v59 = vadd.f32 %v872_v37, %v820_v40  ;;  %v1025_v8 = vmul.f32 %v2347_v1, %v3065_v24  ;;  %v1124_v45 = vmul.f32 %v2349_v5, %v3112_v23 }
 0x141   : > { %v1527_v4 = vsel %vm1457_vm4, %v1524_v16, %v1526_v58  ;;  %v921_v62 = vadd.f32 %v873_v57, %v821_v55  ;;  %v1125_v56 = vmul.f32 %v2349_v5, %v3121_v18  ;;  %v1212_v9 = vadd.f32 %v2816_v0, %v670_v51 }
 0x142   : > { %v1597_v10 = vadd.f32 %v1527_v4, %v1404_v63  ;;  %v1072_v12 = vadd.f32 %v1024_v39, %v972_v60  ;;  %v1073_v17 = vadd.f32 %v1025_v8, %v973_v2  ;;  %v1335_v19 = vrot.slane %v920_v59, 1 }
 0x143   : > { %v535_v53 = vmul.f32 %v2308_v41, %v3009_v14  ;;  %v1336_v22 = vrot.slane %v921_v62, 1  ;;  %v571_v7 = vmul.f32 %v2316_v47, %v3065_v24  ;;  %v639_v16 = vmul.f32 %v2318_v48, %v3121_v18 }
 0x144   : > { %1629 = vst.msk [vmem:[%s2399_s24 + $0xd8] sm:$0xff] %vm242_vm0, %v1597_v10  ;;  %v1172_v46 = vadd.f32 %v1124_v45, %v1072_v12  ;;  %v1173_v25 = vadd.f32 %v1125_v56, %v1073_v17  ;;  %v722_v11 = vmul.f32 %v2310_v42, %v401_v3  ;;  %v774_v27 = vmul.f32 %v2320_v49, %v449_v15 }
 0x145   : > { %v874_v20 = vmul.f32 %v2322_v50, %v498_v61  ;;  %v1337_v29 = vsel %vm1264_vm3, %v1335_v19, %v1336_v22  ;;  %v603_v31 = vadd.f32 %v571_v7, %v535_v53  ;;  %v974_v6 = vmul.f32 %v2312_v43, %v401_v3 }
 0x146   : > { %v1528_v14 = vrot.slane %v1172_v46, 2  ;;  %v1405_v33 = vadd.f32 %v1337_v29, %v1212_v9  ;;  %v1529_v35 = vrot.slane %v1173_v25, 2  ;;  %v822_v26 = vadd.f32 %v774_v27, %v722_v11  ;;  %v452_v25 = vld [vmem:[#allocation2 + $0x190] sm:$0x3]  ;;  %v501_v11 = vld [vmem:[#allocation2 + $0x1a8] sm:$0x3] }
 0x147   : > { %v1026_v21 = vmul.f32 %v2347_v1, %v449_v15  ;;  %v671_v36 = vadd.f32 %v639_v16, %v603_v31  ;;  %v1126_v30 = vmul.f32 %v2349_v5, %v498_v61  ;;  %v536_v38 = vmul.f32 %v2308_v41, %v3056_v13  ;;  %v404_v16 = vld [vmem:[#allocation2 + $0x178] sm:$0x3] }
 0x148   : > { %v572_v44 = vmul.f32 %v2316_v47, %v3112_v23  ;;  %v1530_v54 = vsel %vm1457_vm4, %v1528_v14, %v1529_v35  ;;  %v922_v34 = vadd.f32 %v874_v20, %v822_v26  ;;  %v640_v37 = vmul.f32 %v2318_v48, %v499_v52 }
 0x149   : > { %v1074_v51 = vadd.f32 %v1026_v21, %v974_v6  ;;  %v1598_v57 = vadd.f32 %v1530_v54, %v1405_v33  ;;  %v1213_v32 = vadd.f32 %v2816_v0, %v671_v36  ;;  %v723_v40 = vmul.f32 %v2310_v42, %v3056_v13 }
 0x14a   : > { %v604_v58 = vadd.f32 %v572_v44, %v536_v38  ;;  %v1338_v63 = vrot.slane %v922_v34, 1  ;;  %v724_v55 = vmul.f32 %v2310_v42, %v3065_v24  ;;  %v775_v2 = vmul.f32 %v2320_v49, %v3112_v23 }
 0x14b   : > { %v1174_v60 = vadd.f32 %v1126_v30, %v1074_v51  ;;  %1630 = vst.msk [vmem:[%s2399_s24 + $0xe0] sm:$0xff] %vm242_vm0, %v1598_v57  ;;  %v776_v4 = vmul.f32 %v2320_v49, %v3121_v18  ;;  %v875_v59 = vmul.f32 %v2322_v50, %v499_v52  ;;  %v876_v8 = vmul.f32 %v2322_v50, %v500_v28 }
 0x14c   : > { %v672_v39 = vadd.f32 %v640_v37, %v604_v58  ;;  %v1339_v45 = vsel %vm1264_vm3, %v1336_v22, %v1338_v63  ;;  %v823_v62 = vadd.f32 %v775_v2, %v723_v40  ;;  %v975_v12 = vmul.f32 %v2312_v43, %v3056_v13 }
 0x14d   : > { %v1531_v10 = vrot.slane %v1174_v60, 2  ;;  %v1406_v56 = vadd.f32 %v1339_v45, %v1213_v32  ;;  %v824_v3 = vadd.f32 %v776_v4, %v724_v55  ;;  %v976_v15 = vmul.f32 %v2312_v43, %v3065_v24 }
 0x14e   : > { %v1027_v61 = vmul.f32 %v2347_v1, %v3112_v23  ;;  %v923_v9 = vadd.f32 %v875_v59, %v823_v62  ;;  %v1028_v19 = vmul.f32 %v2347_v1, %v3121_v18  ;;  %v1127_v53 = vmul.f32 %v2349_v5, %v499_v52 }
 0x14f   : > { %v1532_v17 = vsel %vm1457_vm4, %v1529_v35, %v1531_v10  ;;  %v924_v22 = vadd.f32 %v876_v8, %v824_v3  ;;  %v1128_v7 = vmul.f32 %v2349_v5, %v500_v28  ;;  %v1214_v23 = vadd.f32 %v2816_v0, %v672_v39 }
 0x150   : > { %v1599_v46 = vadd.f32 %v1532_v17, %v1406_v56  ;;  %v1075_v13 = vadd.f32 %v1027_v61, %v975_v12  ;;  %v1076_v27 = vadd.f32 %v1028_v19, %v976_v15  ;;  %v1340_v20 = vrot.slane %v923_v9, 1 }
 0x151   : > { %v537_v29 = vmul.f32 %v2308_v41, %v3065_v24  ;;  %v1341_v31 = vrot.slane %v924_v22, 1  ;;  %v573_v6 = vmul.f32 %v2316_v47, %v3121_v18  ;;  %v641_v52 = vmul.f32 %v2318_v48, %v500_v28 }
 0x152   : > { %1631 = vst.msk [vmem:[%s2399_s24 + $0xe8] sm:$0xff] %vm242_vm0, %v1599_v46  ;;  %v1175_v14 = vadd.f32 %v1127_v53, %v1075_v13  ;;  %v1176_v33 = vadd.f32 %v1128_v7, %v1076_v27  ;;  %v725_v35 = vmul.f32 %v2310_v42, %v404_v16  ;;  %v777_v26 = vmul.f32 %v2320_v49, %v452_v25 }
 0x153   : > { %v877_v21 = vmul.f32 %v2322_v50, %v501_v11  ;;  %v1342_v36 = vsel %vm1264_vm3, %v1340_v20, %v1341_v31  ;;  %v605_v41 = vadd.f32 %v573_v6, %v537_v29  ;;  %v977_v24 = vmul.f32 %v2312_v43, %v404_v16 }
 0x154   : > { %v1533_v30 = vrot.slane %v1175_v14, 2  ;;  %v1407_v38 = vadd.f32 %v1342_v36, %v1214_v23  ;;  %v1534_v47 = vrot.slane %v1176_v33, 2  ;;  %v825_v18 = vadd.f32 %v777_v26, %v725_v35 }
 0x155   : > { %v1029_v48 = vmul.f32 %v2347_v1, %v452_v25  ;;  %v673_v44 = vadd.f32 %v641_v52, %v605_v41  ;;  %v1129_v42 = vmul.f32 %v2349_v5, %v501_v11 }
 0x156   : > { %v1535_v49 = vsel %vm1457_vm4, %v1533_v30, %v1534_v47  ;;  %v925_v50 = vadd.f32 %v877_v21, %v825_v18 }
 0x157   : > { %v1077_v54 = vadd.f32 %v1029_v48, %v977_v24  ;;  %v1600_v34 = vadd.f32 %v1535_v49, %v1407_v38  ;;  %v1215_v51 = vadd.f32 %v2816_v0, %v673_v44 }
 0x158   : > { %v1343_v43 = vrot.slane %v925_v50, 1 }
 0x159   : > { %v1177_v28 = vadd.f32 %v1129_v42, %v1077_v54  ;;  %1632 = vst.msk [vmem:[%s2399_s24 + $0xf0] sm:$0xff] %vm242_vm0, %v1600_v34 }
 0x15a   : > { %v1344_v1 = vsel %vm1264_vm3, %v1341_v31, %v1343_v43 }
 0x15b   : > { %v1536_v37 = vrot.slane %v1177_v28, 2  ;;  %v1408_v5 = vadd.f32 %v1344_v1, %v1215_v51 }
 0x15d   : > { %v1537_v57 = vsel %vm1457_vm4, %v1534_v47, %v1536_v37 }
 0x15e   : > { %v1601_v0 = vadd.f32 %v1537_v57, %v1408_v5 }
 0x160   : > { %1633 = vst.msk [vmem:[%s2399_s24 + $0xf8] sm:$0xff] %vm242_vm0, %v1601_v0 }
 0x161   : > { %1931 = shalt.err (!%p1928_p5)
}
 0x162   : > { %s1932_s4 = scalar_lea.hbm %s3227_s8, 4096  ;;  %s1936_s22 = scalar_lea.hbm %s3283_s3, 8192 }
 0x163   : > { %p1933_p9 = scmp.ne.s32.totalorder %s3227_s8, %s1932_s4  ;;  %p1937_p3 = scmp.lt.u32.totalorder %s3227_s8, %s3283_s3 }
 0x164   : > { %p1938_p7 = scmp.lt.u32.totalorder %s1936_s22, %s1932_s4  ;;  %p1940_p4 = scmp.lt.u32.totalorder %s1932_s4, %s3227_s8 }
 0x165   : > { %p1934_p1 = pnand %p1933_p9, %p2132_p10 }
 0x166   : > { %p1939_p13 = por %p1938_p7, %p1937_p3 }
 0x167   : > { %p1935_p2 = pneg %p1934_p1 }
 0x168   : > { %p1941_p6 = por %p1940_p4, %p1939_p13 }
 0x16a   : > { %p1942_p8 = pnand %p1941_p6, %p1935_p2 }
 0x16c   : > { %1945 = shalt.err (!%p1942_p8)
}
 0x16d   : > { %s2014_s10 = smov 128   ;;  %s2015_s11 = smov 8  }
 0x16e   : > { %1785 = dma.vmem_to_hbm [thread:$0]  (%p2132_p10), %s3229_s18, 4096, %s3227_s8, %s1635_s15, %s2014_s10, %s2014_s10, %s2015_s11  }
 0x16f PF: > { %s1664_s26 = sand.u32 1, %s1984_s12   ;;  %p3301_p12 = scmp.ne.s32.totalorder %s3291_s23, 0 }
 0x170   : > { %p3302_p11 = scmp.ge.s32.totalorder %s2004_s17, 2  ;;  %s1665_s7 = scalar_lea.sflag [#allocation5], %s1664_s26 }
 0x172   : > { %p1796_p0 = pnand %p3302_p11, %p3301_p12 }
 0x174   : > { %1979 = dma.done.wait (!%p1796_p0), %s1665_s7, 4096  }
 0x175   : > { %1981 = vsyncadd (!%p1796_p0), %s1665_s7, 4294963200  ;;  %s20_s17 = sadd.s32 1, %s2004_s17   ;;  %s3303_s12 = smov %s1988_s13 }
 0x176   : > { %p17_p5 = scmp.ge.s32.totalorder %s20_s17, 4   ;;  %s3304_s13 = smov %s1992_s14 }
 0x177   : > { %s3305_s14 = smov %s2141_s5  ;;  %s3306_s15 = smov %s2000_s16 }
 0x178   : > { %s3307_s16 = smov %s3309_s28  ;;  %19 = sbr.rel (!%p17_p5) target bundleno = 7 (0x7), region = 88 }
 0x17f   :  { %1670 = vsyncpa [#allocation4], 1 }
 0x180   :  { %1672 = vsyncpa [#allocation4 + $0x1], 1 }
 0x181   :  { %1673 = vsyncpa [#allocation7], 1 }
 0x182   :  { %1674 = vsyncpa [#allocation5], 1 }
 0x183   :  { %1676 = vsyncpa [#allocation5 + $0x1], 1 }

</bundles_post_ra>
